<compile_context>
chip_gen: v7x
topology: tpu7x:2x2x1
jax: 0.10.0
libtpu: 0.0.40
codegen_flags: <defaults>
</compile_context>

<pallas_src>
import math
import numpy as np
import jax
import jax.numpy as jnp
from jax.experimental import pallas as pl
from jax.experimental.pallas import tpu as pltpu


def _pos_embed_kernel(x_ref, w_ref, b_ref, o_ref):
    """One batch tile of the fused, lane-dense positional (Fourier) embedding.

    x_ref: (TM, F)       continuous features for TM rows
    w_ref: (F, F*dim)    block-diagonal, 2*pi-scaled frequency expansion (VMEM-resident)
    b_ref: (1, F*dim)    per-lane phase bias: 0 on sin lanes, pi/2 on cos lanes
    o_ref: (TM, F*dim)   flat output slab (single unmasked lane-dense store)

    cos(t) == sin(t + pi/2), so one matmul + one add + one sin produces both halves.
    """
    x = x_ref[...].astype(jnp.float32)
    phase = jnp.dot(x, w_ref[...], preferred_element_type=jnp.float32) + b_ref[...]
    o_ref[...] = jnp.sin(phase).astype(o_ref.dtype)


def positional_embedder_forward(x, weights, *, block_rows=None):
    """Pallas implementation of PositionalEmbedder.forward.

    Args:
      x:        [B, F] continuous features.
      weights:  [1, F, H] (torch layout) or [F, H] frequency weights, H = dim // 2.
      block_rows: batch rows per grid step. Defaults to an auto size targeting ~2 MiB
        output tiles.

    Returns:
      fourier: [B, F, 2*H] = concat(sin(x*w*2pi), cos(x*w*2pi), axis=-1)
    """
    B, F = x.shape
    if weights.ndim == 3:
        assert weights.shape[0] == 1, "leading dim of weights must be 1"
        w2d = weights[0]
    else:
        assert weights.ndim == 2
        w2d = weights
    assert w2d.shape[0] == F
    H = w2d.shape[-1]
    dim = 2 * H
    FD = F * dim

    # One-time weight prep (tiny F x F*dim tensors, outside the kernel):
    #  * fold the 2*pi scale into the weights,
    #  * duplicate each frequency into its sin lane (f*dim + h) and cos lane (f*dim + H + h),
    #  * expand block-diagonally so x_tile @ w_full == x[m, f] * w[f, h] at every output lane,
    #  * pi/2 bias on cos lanes fuses the cos pass into the same sin() call.
    scaled = (2.0 * math.pi) * w2d.astype(jnp.float32)                     # (F, H)
    w_dup = jnp.concatenate([scaled, scaled], axis=-1)                     # (F, dim)
    w_full = (jnp.eye(F, dtype=jnp.float32)[:, :, None]
              * w_dup[None, :, :]).reshape(F, FD)                          # (F, F*dim) block-diag
    bias = jnp.tile(
        jnp.concatenate([jnp.zeros((H,), jnp.float32),
                         jnp.full((H,), 0.5 * math.pi, jnp.float32)]),
        F).reshape(1, FD)                                                  # (1, F*dim)

    itemsize = jnp.dtype(x.dtype).itemsize
    if block_rows is None:
        # Target ~2 MiB output tiles (HBM efficiency plateaus >= ~1 MiB tiles) while keeping
        # the double-buffered working set well inside every chip's scoped-VMEM default.
        target_bytes = 2 << 20
        block_rows = max(8, target_bytes // max(FD * itemsize, 1))
    tm = min(block_rows, B)
    if tm < B:
        tm = max(8, (tm // 8) * 8)          # sublane-aligned partial-batch tile
    grid = (pl.cdiv(B, tm),)

    # Rough working set: 2x x tiles + 2x out tiles (double buffered), resident weights/bias,
    # and the f32 phase intermediate.  Only used to pick a safe per-chip VMEM limit.
    est_vmem = (2 * tm * F * itemsize + 2 * tm * FD * itemsize
                + F * FD * 4 + FD * 4 + tm * FD * 4)
    vmem_limit = int(min(max(2 * est_vmem, 16 << 20), 32 << 20))

    cost = pl.CostEstimate(
        flops=2 * B * F * FD + B * FD,       # block-diagonal matmul + bias add
        transcendentals=B * FD,              # single fused sin pass (covers sin and cos lanes)
        bytes_accessed=itemsize * (B * F + B * FD) + 4 * (F * FD + FD),
    )

    out_flat = pl.pallas_call(
        _pos_embed_kernel,
        out_shape=jax.ShapeDtypeStruct((B, FD), x.dtype),
        grid=grid,
        in_specs=[
            pl.BlockSpec((tm, F), lambda i: (i, 0)),     # x: tiled over batch, pipelined
            pl.BlockSpec((F, FD), lambda i: (0, 0)),     # weights: constant map -> VMEM-resident
            pl.BlockSpec((1, FD), lambda i: (0, 0)),     # bias:    constant map -> VMEM-resident
        ],
        out_specs=pl.BlockSpec((tm, FD), lambda i: (i, 0)),   # lane-dense flat output slab
        compiler_params=pltpu.CompilerParams(
            # Batch axis is embarrassingly parallel; "parallel" lets Mosaic shard grid steps
            # across TensorCores where available (neutral on single-TC chips).
            dimension_semantics=("parallel",),
            vmem_limit_bytes=vmem_limit,
        ),
        cost_estimate=cost,
    )(x, w_full, bias)

    # Free relayout: (B, F*dim) slab -> (B, F, dim).  Within each feature block the lane order
    # is [sin(h=0..H-1) | cos(h=0..H-1)], matching torch.cat((freqs.sin(), freqs.cos()), -1).
    return out_flat.reshape(B, F, dim)


if __name__ == "__main__":
    # Small, deterministic synthetic setup consistent with PositionalEmbedder.__init__.
    B = 256
    num_features = 8
    dim = 32                      # must be even
    half_dim = dim // 2
    sigma = 0.01                  # freq_init_scale

    key = jax.random.PRNGKey(0)
    kx, kw = jax.random.split(key)

    x = jax.random.normal(kx, (B, num_features), dtype=jnp.float32)
    # nn.init.trunc_normal_(0, sigma, a=-3*sigma, b=3*sigma) equivalent (host-side init).
    weights = sigma * jax.random.truncated_normal(
        kw, -3.0, 3.0, (1, num_features, half_dim), dtype=jnp.float32)

    out = positional_embedder_forward(x, weights, block_rows=64)  # grid=(4,): exercises pipelining
    jax.block_until_ready(out)

    # Reference in float64 numpy.
    xs = np.asarray(x, dtype=np.float64)
    ws = np.asarray(weights, dtype=np.float64).reshape(num_features, half_dim)
    freqs = xs[:, :, None] * ws[None, :, :] * (2.0 * np.pi)
    ref = np.concatenate([np.sin(freqs), np.cos(freqs)], axis=-1)

    assert out.shape == (B, num_features, dim)
    np.testing.assert_allclose(np.asarray(out), ref, rtol=1e-5, atol=1e-5)

    # Also check the auto-sized tile path (single grid step at this small shape).
    out_auto = positional_embedder_forward(x, weights)
    jax.block_until_ready(out_auto)
    np.testing.assert_allclose(np.asarray(out_auto), ref, rtol=1e-5, atol=1e-5)

    print("KERNEL_OK")
</pallas_src>

<mosaic_0001>
module attributes {stable_mosaic.version = 11 : i64} {
  func.func @_pos_embed_kernel(%arg0: i32, %arg1: memref<64x8xf32, #tpu.memory_space<vmem>>, %arg2: memref<8x256xf32, #tpu.memory_space<vmem>>, %arg3: memref<1x256xf32, #tpu.memory_space<vmem>>, %arg4: memref<64x256xf32, #tpu.memory_space<vmem>>) attributes {dimension_semantics = [#tpu.dimension_semantics<parallel>], iteration_bounds = array<i64: 4>, scalar_prefetch = 0 : i64, scratch_operands = 0 : i64, tpu.core_type = #tpu.core_type<tc>, window_params = [{transform_indices = @transform_0, window_bounds = array<i64: 64, 8>}, {pipeline_mode = #tpu.pipeline_mode<synchronous>, transform_indices = @transform_1, window_bounds = array<i64: 8, 256>}, {pipeline_mode = #tpu.pipeline_mode<synchronous>, transform_indices = @transform_2, window_bounds = array<i64: 1, 256>}, {transform_indices = @transform_3, window_bounds = array<i64: 64, 256>}]} {
    %c0 = arith.constant 0 : index
    %c0_0 = arith.constant 0 : index
    %0 = vector.load %arg1[%c0, %c0_0] : memref<64x8xf32, #tpu.memory_space<vmem>>, vector<64x8xf32>
    %c0_1 = arith.constant 0 : index
    %c0_2 = arith.constant 0 : index
    %1 = vector.load %arg2[%c0_1, %c0_2] : memref<8x256xf32, #tpu.memory_space<vmem>>, vector<8x256xf32>
    %cst = arith.constant dense<0.000000e+00> : vector<64x256xf32>
    %2 = tpu.matmul %0, %1, %cst {dimension_numbers = #tpu.dot_dimension_numbers<[1], [0], [0], [1], [0, 0, 1, 1], [], []>} : vector<64x8xf32>, vector<8x256xf32>, vector<64x256xf32> -> vector<64x256xf32>
    %c0_3 = arith.constant 0 : index
    %c0_4 = arith.constant 0 : index
    %3 = vector.load %arg3[%c0_3, %c0_4] : memref<1x256xf32, #tpu.memory_space<vmem>>, vector<1x256xf32>
    %4 = vector.broadcast %3 : vector<1x256xf32> to vector<64x256xf32>
    %5 = arith.addf %2, %4 : vector<64x256xf32>
    %6 = math.sin %5 : vector<64x256xf32>
    %c0_5 = arith.constant 0 : index
    %c0_6 = arith.constant 0 : index
    %7 = vector.load %arg4[%c0_5, %c0_6] : memref<64x256xf32, #tpu.memory_space<vmem>>, vector<64x256xf32>
    tpu.vector_store %arg4[%c0_5, %c0_6], %6 {strides = array<i32>} : memref<64x256xf32, #tpu.memory_space<vmem>>, vector<64x256xf32>,
    return
  }
  func.func @transform_0(%arg0: i32) -> (i32, i32) {
    %c0_i32 = arith.constant 0 : i32
    %c0_i32_0 = arith.constant 0 : i32
    return %arg0, %c0_i32 : i32, i32
  }
  func.func @transform_1(%arg0: i32) -> (i32, i32) {
    %c0_i32 = arith.constant 0 : i32
    %c0_i32_0 = arith.constant 0 : i32
    %c0_i32_1 = arith.constant 0 : i32
    return %c0_i32, %c0_i32_0 : i32, i32
  }
  func.func @transform_2(%arg0: i32) -> (i32, i32) {
    %c0_i32 = arith.constant 0 : i32
    %c0_i32_0 = arith.constant 0 : i32
    %c0_i32_1 = arith.constant 0 : i32
    return %c0_i32, %c0_i32_0 : i32, i32
  }
  func.func @transform_3(%arg0: i32) -> (i32, i32) {
    %c0_i32 = arith.constant 0 : i32
    %c0_i32_0 = arith.constant 0 : i32
    return %arg0, %c0_i32 : i32, i32
  }
}

</mosaic_0001>

<bundles_post_ra>
// kernel: tpu_custom_call.1
= control target key start
LH: loop header
LB: loop body
LE: loop exit
PB: predicated region body
PF: predicated region fallthrough
CT: control target
= control target key end

     0   :  { %8 = vsyncpa [#allocation3], 0  ;;  %s3881_s0 = inlined_call_operand.vmem [shape: f32[256,8], index: 0, kind: input, shape index: {}]   ;;  %s3882_s1 = inlined_call_operand.vmem [shape: f32[8,256], index: 1, kind: input, shape index: {}]   ;;  %s3883_s2 = inlined_call_operand.vmem [shape: f32[1,256], index: 2, kind: input, shape index: {}]   ;;  %s3884_s3 = inlined_call_operand.hbm [shape: f32[256,256], index: 3, kind: output, shape index: {}]  }
   0x1   :  { %10 = vsyncpa [#allocation3 + $0x1], 0  ;;  %s2448_s12 = smov 0   ;;  %s2450_s13 = smov 0  }
   0x2   :  { %s2452_s14 = smov 0   ;;  %s2454_s15 = smov 0  }
   0x3 LB: > { %s2469_s16 = sadd.s32 4294967295, %s2416_s15   ;;  %s2089_s17 = sadd.s32 4294967294, %s2416_s15   ;;  %s2416_s15 = sphi %s2454_s15, %s3918_s15   ;;  %s2412_s14 = sphi %s2452_s14, %s3917_s14   ;;  %s2408_s13 = sphi %s2450_s13, %s3916_s13   ;;  %s2404_s12 = sphi %s2448_s12, %s3915_s12  }
   0x4   : > { %s2473_s18 = sadd.s32 1, %s2416_s15   ;;  %s91_s19 = sadd.s32 1, %s2412_s14 }
   0x5   : > { %s88_s20 = ssub.s32 %s2416_s15, %s2473_s18  ;;  %p101_p0 = scmp.ne.s32.totalorder %s2412_s14, %s2408_s13 }
   0x6   : > { %p89_p1 = scmp.eq.s32.totalorder %s88_s20, 0  ;;  %p102_p2 = scmp.eq.s32.totalorder %s2469_s16, 3 }
   0x7   : > { %p107_p3 = scmp.ne.s32.totalorder %s2408_s13, %s2404_s12  ;;  %p108_p4 = scmp.eq.s32.totalorder %s2089_s17, 3 }
   0x8   : > { %s2484_s21 = scalar_select %p89_p1, %s2412_s14, %s91_s19  }
   0x9   : > { %p2486_p5 = por %p102_p2, %p101_p0  ;;  %p2490_p6 = por %p108_p4, %p107_p3 }
   0xa   : > { %p2092_p7 = scmp.ge.s32.totalorder %s2416_s15, 1  ;;  %p141_p8 = scmp.lt.s32.totalorder %s2416_s15, 5 }
   0xc   : > { %p142_p9 = pnand %p2092_p7, %p141_p8 }
   0xd   : > { %v181_v0 = vld [vmem:[%s3882_s1 + $0x8] sm:$0xff] (!%p142_p9)  ;;  %v180_v1 = vld [vmem:[%s3882_s1] sm:$0xff] (!%p142_p9)  ;;  %s2094_s28 = sshll.u32 (!%p142_p9), %s2469_s16, 3  ;;  %v2418_v2 = vmov (!%p142_p9), 0.0   ;;  %vm194_vm0 = vcmask (!%p142_p9), 64512   ;;  %v184_v11 = vlaneseq (!%p142_p9)  ;;  %s162_s8 = sand.u32 (!%p142_p9), 1, %s2408_s13  }
   0xe   : > { %145 = sbr.rel (%p142_p9) target bundleno = 686 (0x2ae), region = 32  ;;  %219 = vmatprep.subr.mxu0 (!%p142_p9), %v181_v0  ;;  %2176 = vmatprep.subr.mxu1 (!%p142_p9), %v181_v0  ;;  %p166_p10 = scmp.lt.s32.totalorder (!%p142_p9), %s2094_s28, 31  ;;  %v182_v14 = vld [vmem:[%s3883_s2] sm:$0x3] (!%p142_p9)  ;;  %v2419_v58 = vmov (!%p142_p9), 683565275  }
   0xf   : > { %220 = vmatpush1.msra.mxu0 (!%p142_p9), %v180_v1  ;;  %2177 = vmatpush1.msra.mxu1 (!%p142_p9), %v180_v1  ;;  %v185_v12 = vshrl.u32 (!%p142_p9), %v184_v11, 7  ;;  %v2420_v62 = vmov (!%p142_p9), 2475754826   ;;  %v2421_v0 = vmov (!%p142_p9), 2131351028   ;;  %s2093_s9 = sshll.u32 (!%p142_p9), %s162_s8, 7 }
  0x10   : > { %283 = vmatprep.mubr.f32.mxu0 (!%p142_p9), %v2418_v2  ;;  %307 = vmatprep.mubr.f32.mxu1 (!%p142_p9), %v2418_v2  ;;  %v2424_v11 = vmov (!%p142_p9), 1326507024   ;;  %s2837_s10 = scalar_lea.vmem (!%p142_p9), [#allocation2], %s2093_s9  ;;  %s2175_s11 = sshll.u32 (!%p142_p9), %s2469_s16, 11 }
  0x11   : > { %v186_v13 = vsub.s32 (!%p142_p9), 0, %v185_v12  ;;  %v190_v15 = vsub.s32 (!%p142_p9), 1, %v185_v12  ;;  %s2027_s17 = sshll.u32 (!%p142_p9), %s2837_s10, 4  ;;  %s3832_s24 = scalar_lea.hbm (!%p142_p9), %s3884_s3, %s2175_s11  ;;  %s3834_s17 = int_to_ptr.vmem [resolvable:$true] %s2027_s17 }
  0x12   : > { %s3840_s16 = scalar_lea.sflag (!%p142_p9), [#allocation3], %s162_s8  ;;  %s2354_s25 = scalar_lea.vmem (!%p142_p9), %s3834_s17, 2048 }
  0x13   : > { %v2517_v16 = vrot.slane (!%p142_p9), %v182_v14, %v186_v13  ;;  %v2519_v17 = vrot.slane (!%p142_p9), %v182_v14, %v190_v15  ;;  %p2355_p11 = scmp.ne.s32.totalorder (!%p142_p9), %s3834_s17, %s2354_s25  ;;  %s2425_s26 = smov (!%p142_p9), [#allocation2]  }
  0x14   : > { %s2358_s27 = sshll.u32 (!%p142_p9), %s2425_s26, 4  ;;  %s2359_s27 = int_to_ptr.vmem [resolvable:$false] %s2358_s27 }
  0x15   : > { %s3920_s28 = smov (!%p166_p10, %s2094_s28), 31  ;;  %p2356_p12 = pnand %p2355_p11, %p2486_p5 }
  0x16   : > { %s2095_s29 = sshll.u32 %s3920_s28, 3  ;;  %s2360_s28 = scalar_lea.vmem %s2359_s27, 4096 }
  0x17   : > { %s169_s5 = scalar_lea.vmem %s3881_s0, %s2095_s29  ;;  %p2357_p13 = pneg %p2356_p12 }
  0x18   : > { %v172_v3 = vld [vmem:[%s169_s5] sm:$0xff]  ;;  %v173_v5 = vld [vmem:[%s169_s5 + $0x8] sm:$0xff]  ;;  %v174_v7 = vld [vmem:[%s169_s5 + $0x10] sm:$0xff]  ;;  %p2361_p0 = scmp.lt.s32.totalorder %s3834_s17, %s2359_s27  ;;  %p2362_p1 = scmp.lt.s32.totalorder %s2360_s28, %s2354_s25 }
  0x19   : > { %v176_v4 = vld [vmem:[%s169_s5 + $0x20] sm:$0xff]  ;;  %2096 = vmatmul.mubr.msk.f32.vlgmr.msra.gmra.mrb[0].mxu0 %vm194_vm0, %v172_v3  ;;  %v177_v6 = vld [vmem:[%s169_s5 + $0x28] sm:$0xff]  ;;  %v178_v8 = vld [vmem:[%s169_s5 + $0x30] sm:$0xff] }
  0x1a   : > { %2100 = vmatmul.mubr.msk.f32.vlgmr.msra.gmra.mrb[0].mxu1 %vm194_vm0, %v176_v4  ;;  %289 = vmatprep.mubr.f32.mxu0 %v2418_v2  ;;  %v175_v9 = vld [vmem:[%s169_s5 + $0x18] sm:$0xff]  ;;  %v2423_v4 = vmov 920167782   ;;  %p2363_p2 = por %p2362_p1, %p2361_p0 }
  0x1b   : > { %313 = vmatprep.mubr.f32.mxu1 %v2418_v2  ;;  %v179_v10 = vld [vmem:[%s169_s5 + $0x38] sm:$0xff] }
  0x1c   : > { %p2364_p3 = pnand %p2363_p2, %p2357_p13 }
  0x1d   : > { %2097 = vmatmul.mubr.msk.f32.gmra.mrb[2].mxu0 %vm194_vm0, %v173_v5 }
  0x1e   : > { %2101 = vmatmul.mubr.msk.f32.gmra.mrb[2].mxu1 %vm194_vm0, %v177_v6  ;;  %295 = vmatprep.mubr.f32.mxu0 %v2418_v2 }
  0x1f   : > { %319 = vmatprep.mubr.f32.mxu1 %v2418_v2 }
  0x21   : > { %2098 = vmatmul.mubr.msk.f32.gmra.mrb[4].mxu0 %vm194_vm0, %v174_v7 }
  0x22   : > { %2102 = vmatmul.mubr.msk.f32.gmra.mrb[4].mxu1 %vm194_vm0, %v178_v8  ;;  %301 = vmatprep.mubr.f32.mxu0 %v2418_v2 }
  0x23   : > { %325 = vmatprep.mubr.f32.mxu1 %v2418_v2  ;;  %v2422_v2 = vmov 2102212464  }
  0x25   : > { %2099 = vmatmul.mubr.msk.f32.gmra.mrb[6].mxu0 %vm194_vm0, %v175_v9 }
  0x26   : > { %2103 = vmatmul.mubr.msk.f32.gmra.mrb[6].mxu1 %vm194_vm0, %v179_v10 }
  0xec   : > { %v285_v18 = vpop.f32.mrb[0].mxu0 }
  0xed   : > { %v309_v19 = vpop.f32.mrb[0].mxu1  ;;  %v2522_v20 = vadd.f32 %v285_v18, %v2517_v16  ;;  %v287_v22 = vpop.f32.mrb[1].mxu0 }
  0xee   : > { %v2525_v21 = vadd.f32 %v309_v19, %v2517_v16  ;;  %v311_v23 = vpop.f32.mrb[1].mxu1  ;;  %v2528_v24 = vadd.f32 %v287_v22, %v2519_v17 }
  0xef   : > { %v332_v25 = vand.u32 2147483647, %v2522_v20  ;;  %v335_v26 = vand.u32 2139095040, %v2522_v20  ;;  %v2546_v42 = vadd.f32 %v311_v23, %v2519_v17  ;;  %vm334_vm14 = vcmp.lt.s32.totalorder %v2522_v20, 0 }
  0xf0   : > { %v1164_v27 = vand.u32 2147483647, %v2525_v21  ;;  %v1167_v28 = vand.u32 2139095040, %v2525_v21  ;;  %v2534_v29 = vpop.f32.mrb[2].mxu0  ;;  %v439_v35 = vand.u32 2139095040, %v2528_v24 }
  0xf1   : > { %v2536_v30 = vpop.f32.mrb[2].mxu1  ;;  %v336_v31 = vshrl.u32 %v335_v26, 23  ;;  %v339_v32 = vand.u32 8388607, %v332_v25  ;;  %v2543_v37 = vpop.f32.mrb[3].mxu0  ;;  %v1271_v56 = vand.u32 2139095040, %v2546_v42 }
  0xf2   : > { %v1168_v33 = vshrl.u32 %v1167_v28, 23  ;;  %v1171_v34 = vand.u32 8388607, %v1164_v27  ;;  %v440_v39 = vshrl.u32 %v439_v35, 23  ;;  %v436_v45 = vand.u32 2147483647, %v2528_v24 }
  0xf3   : > { %v2104_v36 = vadd.s32 4294967169, %v336_v31  ;;  %v340_v40 = vor.u32 8388608, %v339_v32  ;;  %v2549_v47 = vpop.f32.mrb[3].mxu1  ;;  %vm2649_vm15 = vcmp.le.f32.partialorder %v332_v25, 0.7853982 }
  0xf4   : > { %v2136_v38 = vadd.s32 4294967169, %v1168_v33  ;;  %v1172_v43 = vor.u32 8388608, %v1171_v34  ;;  %v2108_v46 = vadd.s32 4294967169, %v440_v39  ;;  %v2557_v54 = vand.u32 8388607, %v436_v45 }
  0xf5   : > { %v342_v41 = vadd.s32 1, %v2104_v36  ;;  %v2551_v51 = vshll.u32 %v340_v40, 8 }
  0xf6   : > { %v1174_v44 = vadd.s32 1, %v2136_v38  ;;  %v2553_v53 = vshll.u32 %v1172_v43, 8  ;;  %v2559_v55 = vadd.s32 1, %v2108_v46 }
  0xf7   : > { %vm343_vm1 = vcmp.gt.s32.totalorder %v342_v41, 0 }
  0xf8   : > { %v344_v48 = vsel %vm343_vm1, %v342_v41, 0  ;;  %vm1175_vm2 = vcmp.gt.s32.totalorder %v1174_v44, 0  ;;  %vm447_vm7 = vcmp.gt.s32.totalorder %v2559_v55, 0 }
  0xf9   : > { %v345_v49 = vshrl.u32 %v344_v48, 5  ;;  %v346_v50 = vand.u32 31, %v344_v48  ;;  %v1176_v52 = vsel %vm1175_vm2, %v1174_v44, 0 }
  0xfa   : > { %v2563_v60 = vshrl.u32 %v1176_v52, 5  ;;  %v1178_v61 = vand.u32 31, %v1176_v52 }
  0xfb   : > { %v347_v57 = vsub.s32 32, %v346_v50  ;;  %v349_v59 = vshll.u32 %v2419_v58, %v346_v50  ;;  %v352_v63 = vshll.u32 %v2420_v62, %v346_v50  ;;  %v355_v1 = vshll.u32 %v2421_v0, %v346_v50 }
  0xfc   : > { %v358_v3 = vshll.u32 %v2422_v2, %v346_v50  ;;  %v361_v5 = vshll.u32 %v2423_v4, %v346_v50  ;;  %vm364_vm3 = vcmp.lt.s32.totalorder %v345_v49, 1  ;;  %vm365_vm4 = vcmp.lt.s32.totalorder %v345_v49, 2 }
  0xfd   : > { %v350_v6 = vshrl.u32 %v2420_v62, %v347_v57  ;;  %v353_v7 = vshrl.u32 %v2421_v0, %v347_v57  ;;  %v356_v8 = vshrl.u32 %v2422_v2, %v347_v57  ;;  %v348_v9 = vshrl.u32 %v2419_v58, %v347_v57 }
  0xfe   : > { %v359_v10 = vshrl.u32 %v2423_v4, %v347_v57  ;;  %v362_v12 = vshrl.u32 %v2424_v11, %v347_v57  ;;  %v1179_v18 = vsub.s32 32, %v1178_v61  ;;  %vm366_vm5 = vcmp.lt.s32.totalorder %v345_v49, 3 }
  0xff   : > { %v351_v13 = vor.u32 %v350_v6, %v349_v59  ;;  %v354_v14 = vor.u32 %v353_v7, %v352_v63  ;;  %v357_v15 = vor.u32 %v356_v8, %v355_v1  ;;  %vm367_vm6 = vcmp.lt.s32.totalorder %v345_v49, 4 }
 0x100   : > { %v360_v19 = vor.u32 %v359_v10, %v358_v3  ;;  %v363_v22 = vor.u32 %v362_v12, %v361_v5  ;;  %v1181_v35 = vshll.u32 %v2419_v58, %v1178_v61  ;;  %v1182_v39 = vshrl.u32 %v2420_v62, %v1179_v18 }
 0x101   : > { %v368_v23 = vsel %vm364_vm3, %v348_v9, %v351_v13  ;;  %v369_v26 = vsel %vm367_vm6, %v357_v15, 2102212464  ;;  %v372_v28 = vsel %vm364_vm3, %v351_v13, %v354_v14  ;;  %v376_v31 = vsel %vm364_vm3, %v354_v14, %v357_v15 }
 0x102   : > { %v370_v32 = vsel %vm366_vm5, %v354_v14, %v369_v26  ;;  %v373_v33 = vsel %vm367_vm6, %v360_v19, 920167782  ;;  %v377_v34 = vsel %vm367_vm6, %v363_v22, 1326507024  ;;  %v1184_v40 = vshll.u32 %v2420_v62, %v1178_v61 }
 0x103   : > { %v374_v36 = vsel %vm366_vm5, %v357_v15, %v373_v33  ;;  %v378_v38 = vsel %vm366_vm5, %v360_v19, %v377_v34  ;;  %v371_v41 = vsel %vm365_vm4, %v368_v23, %v370_v32  ;;  %v1185_v46 = vshrl.u32 %v2421_v0, %v1179_v18 }
 0x104   : > { %v375_v43 = vsel %vm365_vm4, %v372_v28, %v374_v36  ;;  %v379_v44 = vsel %vm365_vm4, %v376_v31, %v378_v38  ;;  %v1183_v59 = vor.u32 %v1182_v39, %v1181_v35  ;;  %v1187_v1 = vshll.u32 %v2421_v0, %v1178_v61 }
 0x105   : > { %v2587_v48 = vmul.u32.u64.low %v2551_v51, %v379_v44  ;;  %v2588_v50 = vmul.u32.u64.high %v2551_v51, %v379_v44, %v2587_v48  ;;  %v2591_v52 = vmul.u32.u64.low %v2551_v51, %v375_v43  ;;  %v2592_v57 = vmul.u32.u64.high %v2551_v51, %v375_v43, %v2591_v52 }
 0x106   : > { %v1186_v63 = vor.u32 %v1185_v46, %v1184_v40  ;;  %v1188_v3 = vshrl.u32 %v2422_v2, %v1179_v18  ;;  %v1180_v5 = vshrl.u32 %v2419_v58, %v1179_v18  ;;  %v1190_v49 = vshll.u32 %v2422_v2, %v1178_v61 }
 0x107   : > { %v1191_v6 = vshrl.u32 %v2423_v4, %v1179_v18  ;;  %v1194_v7 = vshrl.u32 %v2424_v11, %v1179_v18  ;;  %v387_v8 = vmul.u32 %v2551_v51, %v371_v41  ;;  %v1193_v10 = vshll.u32 %v2423_v4, %v1178_v61 }
 0x108   : > { %v1189_v9 = vor.u32 %v1188_v3, %v1187_v1  ;;  %vm1196_vm8 = vcmp.lt.s32.totalorder %v2563_v60, 1  ;;  %vm389_vm9 = vc.u32 %v2588_v50, %v2591_v52  ;;  %v390_v12 = vadd.s32 1, %v2592_v57  ;;  %v2632_v3 = vpop.f32.mrb[4].mxu0 }
 0x109   : > { %v1192_v13 = vor.u32 %v1191_v6, %v1190_v49  ;;  %vm1197_vm10 = vcmp.lt.s32.totalorder %v2563_v60, 2  ;;  %v1195_v14 = vor.u32 %v1194_v7, %v1193_v10  ;;  %vm1198_vm11 = vcmp.lt.s32.totalorder %v2563_v60, 3 }
 0x10a   : > { %vm1199_vm12 = vcmp.lt.s32.totalorder %v2563_v60, 4  ;;  %v1204_v15 = vsel %vm1196_vm8, %v1183_v59, %v1186_v63  ;;  %v391_v51 = vsel %vm389_vm9, %v390_v12, %v2592_v57  ;;  %v1208_v61 = vsel %vm1196_vm8, %v1186_v63, %v1189_v9 }
 0x10b   : > { %v1201_v18 = vsel %vm1199_vm12, %v1189_v9, 2102212464  ;;  %v1205_v19 = vsel %vm1199_vm12, %v1192_v13, 920167782  ;;  %v392_v22 = vadd.s32 %v391_v51, %v387_v8  ;;  %v1200_v23 = vsel %vm1196_vm8, %v1180_v5, %v1183_v59 }
 0x10c   : > { %v1206_v26 = vsel %vm1198_vm11, %v1189_v9, %v1205_v19  ;;  %v1209_v28 = vsel %vm1199_vm12, %v1195_v14, 1326507024  ;;  %v1202_v31 = vsel %vm1198_vm11, %v1186_v63, %v1201_v18  ;;  %v448_v34 = vsel %vm447_vm7, %v2559_v55, 0 }
 0x10d   : > { %v1207_v32 = vsel %vm1197_vm10, %v1204_v15, %v1206_v26  ;;  %v1210_v33 = vsel %vm1198_vm11, %v1192_v13, %v1209_v28  ;;  %v393_v35 = vadd.s32 536870912, %v392_v22  ;;  %v1268_v43 = vand.u32 2147483647, %v2546_v42 }
 0x10e   : > { %v1211_v36 = vsel %vm1197_vm10, %v1208_v61, %v1210_v33  ;;  %v2617_v38 = vmul.u32.u64.low %v2553_v53, %v1207_v32  ;;  %v2618_v39 = vmul.u32.u64.high %v2553_v53, %v1207_v32, %v2617_v38  ;;  %v1203_v46 = vsel %vm1197_vm10, %v1200_v23, %v1202_v31 }
 0x10f   : > { %v2622_v40 = vmul.u32.u64.low %v2553_v53, %v1211_v36  ;;  %v2623_v41 = vmul.u32.u64.high %v2553_v53, %v1211_v36, %v2622_v40  ;;  %v394_v44 = vshrl.u32 %v393_v35, 30  ;;  %v444_v55 = vor.u32 8388608, %v2557_v54 }
 0x110   : > { %v450_v48 = vand.u32 31, %v448_v34  ;;  %v1222_v59 = vadd.s32 1, %v2618_v39  ;;  %v1272_v1 = vshrl.u32 %v1271_v56, 23  ;;  %v1219_v5 = vmul.u32 %v2553_v53, %v1203_v46 }
 0x111   : > { %v395_v57 = vshll.u32 %v394_v44, 30  ;;  %vm1221_vm13 = vc.u32 %v2623_v41, %v2617_v38  ;;  %v2639_v60 = vand.u32 8388607, %v1268_v43  ;;  %v2645_v6 = vshll.u32 %v444_v55, 8 }
 0x112   : > { %v451_v63 = vsub.s32 32, %v450_v48  ;;  %v1223_v49 = vsel %vm1221_vm13, %v1222_v59, %v2618_v39  ;;  %v388_v53 = vadd.s32 %v2591_v52, %v2588_v50  ;;  %v2654_v8 = vshrl.u32 %v448_v34, 5 }
 0x113   : > { %v2642_v54 = vsub.s32 %v392_v22, %v395_v57  ;;  %v1224_v7 = vadd.s32 %v1223_v49, %v1219_v5  ;;  %v2140_v14 = vadd.s32 4294967169, %v1272_v1  ;;  %v418_v15 = vsub.s32 4, %v394_v44 }
 0x114   : > { %v454_v9 = vshrl.u32 %v2420_v62, %v451_v63  ;;  %v457_v12 = vshrl.u32 %v2421_v0, %v451_v63  ;;  %v460_v13 = vshrl.u32 %v2422_v2, %v451_v63  ;;  %v453_v25 = vshll.u32 %v2419_v58, %v450_v48 }
 0x115   : > { %v398_v10 = vsub.s32 0, %v2642_v54  ;;  %v1225_v51 = vadd.s32 536870912, %v1224_v7  ;;  %v1276_v18 = vor.u32 8388608, %v2639_v60  ;;  %v456_v52 = vshll.u32 %v2420_v62, %v450_v48 }
 0x116   : > { %v459_v19 = vshll.u32 %v2421_v0, %v450_v48  ;;  %v463_v61 = vshrl.u32 %v2423_v4, %v451_v63  ;;  %v455_v23 = vor.u32 %v454_v9, %v453_v25  ;;  %v462_v26 = vshll.u32 %v2422_v2, %v450_v48 }
 0x117   : > { %v2105_v50 = vmin.u32 %v398_v10, %v2642_v54  ;;  %v1226_v22 = vshrl.u32 %v1225_v51, 30  ;;  %v466_v28 = vshrl.u32 %v2424_v11, %v451_v63  ;;  %v458_v32 = vor.u32 %v457_v12, %v456_v52 }
 0x118   : > { %v461_v33 = vor.u32 %v460_v13, %v459_v19  ;;  %v465_v34 = vshll.u32 %v2423_v4, %v450_v48  ;;  %v419_v35 = vsel %vm334_vm14, %v418_v15, %v394_v44  ;;  %v464_v39 = vor.u32 %v463_v61, %v462_v26 }
 0x119   : > { %v400_v31 = vclz %v2105_v50  ;;  %v1227_v36 = vshll.u32 %v1226_v22, 30  ;;  %vm468_vm0 = vcmp.lt.s32.totalorder %v2654_v8, 1  ;;  %vm469_vm1 = vcmp.lt.s32.totalorder %v2654_v8, 2 }
 0x11a   : > { %v467_v46 = vor.u32 %v466_v28, %v465_v34  ;;  %vm471_vm2 = vcmp.lt.s32.totalorder %v2654_v8, 4  ;;  %vm1166_vm3 = vcmp.lt.s32.totalorder %v2525_v21, 0  ;;  %v452_v57 = vshrl.u32 %v2419_v58, %v451_v63  ;;  %v2712_v34 = vpop.f32.mrb[4].mxu1 }
 0x11b   : > { %v2106_v40 = vadd.s32 4294967294, %v400_v31  ;;  %v2675_v55 = vsub.s32 %v1224_v7, %v1227_v36  ;;  %vm470_vm4 = vcmp.lt.s32.totalorder %v2654_v8, 3  ;;  %v477_v44 = vsel %vm471_vm2, %v464_v39, 920167782 }
 0x11c   : > { %v421_v48 = vsel %vm2649_vm15, 0, %v419_v35  ;;  %v476_v59 = vsel %vm468_vm0, %v455_v23, %v458_v32  ;;  %v478_v1 = vsel %vm470_vm4, %v461_v33, %v477_v44  ;;  %v1250_v7 = vsub.s32 4, %v1226_v22 }
 0x11d   : > { %vm2107_vm5 = vcmp.lt.s32.totalorder %v2106_v40, 0  ;;  %v1230_v49 = vsub.s32 0, %v2675_v55  ;;  %v480_v63 = vsel %vm468_vm0, %v458_v32, %v461_v33  ;;  %vm2692_vm6 = vcmp.le.f32.partialorder %v1164_v27, 0.7853982 }
 0x11e   : > { %v403_v5 = vsel %vm2107_vm5, 0, %v2106_v40  ;;  %v473_v13 = vsel %vm471_vm2, %v461_v33, 2102212464  ;;  %v481_v15 = vsel %vm471_vm2, %v467_v46, 1326507024  ;;  %v479_v50 = vsel %vm469_vm1, %v476_v59, %v478_v1 }
 0x11f   : > { %v404_v9 = vsub.s32 32, %v403_v5  ;;  %v408_v10 = vsub.s32 4294967266, %v403_v5  ;;  %v405_v51 = vshll.u32 %v2642_v54, %v403_v5  ;;  %v2137_v25 = vmin.u32 %v1230_v49, %v2675_v55 }
 0x120   : > { %v482_v52 = vsel %vm470_vm4, %v464_v39, %v481_v15  ;;  %v1278_v26 = vadd.s32 1, %v2140_v14  ;;  %v425_v28 = vadd.s32 3, %v421_v48  ;;  %v472_v33 = vsel %vm468_vm0, %v452_v57, %v455_v23 }
 0x121   : > { %v406_v27 = vshrl.u32 %v388_v53, %v404_v9  ;;  %v409_v19 = vadd.s32 127, %v408_v10  ;;  %v483_v61 = vsel %vm469_vm1, %v480_v63, %v482_v52  ;;  %v1232_v31 = vclz %v2137_v25 }
 0x122   : > { %v474_v54 = vsel %vm470_vm4, %v458_v32, %v473_v13  ;;  %v2715_v39 = vmul.u32.u64.low %v2645_v6, %v483_v61  ;;  %v2716_v53 = vmul.u32.u64.high %v2645_v6, %v483_v61, %v2715_v39  ;;  %vm1279_vm7 = vcmp.gt.s32.totalorder %v1278_v26, 0 }
 0x123   : > { %v407_v35 = vor.u32 %v406_v27, %v405_v51  ;;  %v410_v36 = vshll.u32 %v409_v19, 23  ;;  %v2138_v40 = vadd.s32 4294967294, %v1232_v31  ;;  %v1220_v23 = vadd.s32 %v2617_v38, %v2623_v41 }
 0x124   : > { %v2719_v46 = vmul.u32.u64.low %v2645_v6, %v479_v50  ;;  %v2720_v14 = vmul.u32.u64.high %v2645_v6, %v479_v50, %v2719_v46  ;;  %v1251_v32 = vsel %vm1166_vm3, %v1250_v7, %v1226_v22  ;;  %v1280_v57 = vsel %vm1279_vm7, %v1278_v26, 0 }
 0x125   : > { %v411_v44 = vor.u32 4788187, %v410_v36  ;;  %v2727_v48 = vand.u32 3, %v425_v28  ;;  %vm2139_vm8 = vcmp.lt.s32.totalorder %v2138_v40, 0  ;;  %v475_v59 = vsel %vm469_vm1, %v472_v33, %v474_v54 }
 0x126   : > { %v1282_v1 = vand.u32 31, %v1280_v57  ;;  %v414_v49 = vcvt.s32.f32 %v407_v35  ;;  %v1235_v63 = vsel %vm2139_vm8, 0, %v2138_v40  ;;  %vm493_vm9 = vc.u32 %v2716_v53, %v2719_v46 }
 0x127   : > { %v412_v5 = vand.u32 2147483647, %v411_v44  ;;  %v1236_v9 = vsub.s32 32, %v1235_v63  ;;  %v1240_v10 = vsub.s32 4294967266, %v1235_v63  ;;  %v1253_v38 = vsel %vm2692_vm6, 0, %v1251_v32 }
 0x128   : > { %v494_v41 = vadd.s32 1, %v2720_v14  ;;  %v491_v7 = vmul.u32 %v2645_v6, %v475_v59  ;;  %v2737_v13 = vshrl.u32 %v1280_v57, 5  ;;  %v1283_v8 = vsub.s32 32, %v1282_v1 }
 0x129   : > { %v415_v22 = vmul.f32 %v414_v49, %v412_v5  ;;  %v1237_v15 = vshll.u32 %v2675_v55, %v1235_v63  ;;  %v1238_v51 = vshrl.u32 %v1220_v23, %v1236_v9  ;;  %v1241_v25 = vadd.s32 127, %v1240_v10 }
 0x12a   : > { %v495_v50 = vsel %vm493_vm9, %v494_v41, %v2720_v14  ;;  %v1285_v19 = vshll.u32 %v2419_v58, %v1282_v1  ;;  %v1286_v61 = vshrl.u32 %v2420_v62, %v1283_v8  ;;  %v1288_v31 = vshll.u32 %v2420_v62, %v1282_v1 }
 0x12b   : > { %v416_v52 = vxor.u32 2147483648, %v415_v22  ;;  %v496_v27 = vadd.s32 %v495_v50, %v491_v7  ;;  %v1239_v26 = vor.u32 %v1238_v51, %v1237_v15  ;;  %v1242_v28 = vshll.u32 %v1241_v25, 23 }
 0x12c   : > { %v1289_v6 = vshrl.u32 %v2421_v0, %v1283_v8  ;;  %v1291_v54 = vshll.u32 %v2421_v0, %v1282_v1  ;;  %v1292_v35 = vshrl.u32 %v2422_v2, %v1283_v8  ;;  %v1287_v40 = vor.u32 %v1286_v61, %v1285_v19 }
 0x12d   : > { %v417_v33 = vsel %vm334_vm14, %v416_v52, %v415_v22  ;;  %v497_v55 = vadd.s32 536870912, %v496_v27  ;;  %v1243_v39 = vor.u32 4788187, %v1242_v28  ;;  %v1294_v14 = vshll.u32 %v2422_v2, %v1282_v1 }
 0x12e   : > { %v420_v36 = vsel %vm2649_vm15, %v2522_v20, %v417_v33  ;;  %v1246_v44 = vcvt.s32.f32 %v1239_v26  ;;  %v1295_v32 = vshrl.u32 %v2423_v4, %v1283_v8  ;;  %v1290_v59 = vor.u32 %v1289_v6, %v1288_v31 }
 0x12f   : > { %2290 = vcosq.f32 %v420_v36  ;;  %v2753_v23 = vshrl.u32 %v497_v55, 30  ;;  %v1244_v57 = vand.u32 2147483647, %v1243_v39  ;;  %v1298_v5 = vshrl.u32 %v2424_v11, %v1283_v8 }
 0x130   : > { %2292 = vsinq.f32 %v420_v36  ;;  %v1296_v63 = vor.u32 %v1295_v32, %v1294_v14  ;;  %v1293_v9 = vor.u32 %v1292_v35, %v1291_v54  ;;  %v1297_v10 = vshll.u32 %v2423_v4, %v1282_v1 }
 0x131   : > { %v499_v49 = vshll.u32 %v2753_v23, 30  ;;  %v1247_v56 = vmul.f32 %v1246_v44, %v1244_v57  ;;  %v1257_v41 = vadd.s32 3, %v1253_v38  ;;  %vm1300_vm10 = vcmp.lt.s32.totalorder %v2737_v13, 1 }
 0x132   : > { %v2764_v7 = vshll.u32 %v1276_v18, 8  ;;  %vm428_vm11 = vcmp.eq.s32.totalorder %v2727_v48, 0  ;;  %v1299_v51 = vor.u32 %v1298_v5, %v1297_v10  ;;  %vm1303_vm12 = vcmp.lt.s32.totalorder %v2737_v13, 4 }
 0x133   : > { %v2759_v22 = vsub.s32 %v496_v27, %v499_v49  ;;  %v1248_v15 = vxor.u32 2147483648, %v1247_v56  ;;  %v1308_v25 = vsel %vm1300_vm10, %v1287_v40, %v1290_v59  ;;  %vm427_vm13 = vcmp.lt.s32.totalorder %v2727_v48, 2 }
 0x134   : > { %v1284_v38 = vshrl.u32 %v2419_v58, %v1283_v8  ;;  %vm1302_vm14 = vcmp.lt.s32.totalorder %v2737_v13, 3  ;;  %v1309_v60 = vsel %vm1303_vm12, %v1296_v63, 920167782  ;;  %vm424_vm15 = vweird.f32 %v2522_v20 }
 0x135   : > { %v502_v1 = vsub.s32 0, %v2759_v22  ;;  %v1249_v18 = vsel %vm1166_vm3, %v1248_v15, %v1247_v56  ;;  %vm438_vm0 = vcmp.lt.s32.totalorder %v2528_v24, 0  ;;  %vm1301_vm1 = vcmp.lt.s32.totalorder %v2737_v13, 2 }
 0x136   : > { %v1305_v50 = vsel %vm1303_vm12, %v1293_v9, 2102212464  ;;  %v1310_v8 = vsel %vm1302_vm14, %v1293_v9, %v1309_v60  ;;  %v1252_v52 = vsel %vm2692_vm6, %v2525_v21, %v1249_v18  ;;  %v1312_v61 = vsel %vm1300_vm10, %v1290_v59, %v1293_v9 }
 0x137   : > { %v2109_v27 = vmin.u32 %v502_v1, %v2759_v22  ;;  %v1311_v19 = vsel %vm1301_vm1, %v1308_v25, %v1310_v8  ;;  %2294 = vcosq.f32 %v1252_v52  ;;  %v1313_v26 = vsel %vm1303_vm12, %v1299_v51, 1326507024 }
 0x138   : > { %v2797_v28 = vmul.u32.u64.low %v2764_v7, %v1311_v19  ;;  %v2798_v31 = vmul.u32.u64.high %v2764_v7, %v1311_v19, %v2797_v28  ;;  %vm431_vm2 = vcmp.eq.s32.totalorder %v2727_v48, 2  ;;  %2296 = vsinq.f32 %v1252_v52 }
 0x139   : > { %v2291_v6 = vpop.eup %2290  ;;  %v504_v12 = vclz %v2109_v27  ;;  %v522_v33 = vsub.s32 4, %v2753_v23  ;;  %v1304_v35 = vsel %vm1300_vm10, %v1284_v38, %v1287_v40  ;;  %v1306_v36 = vsel %vm1302_vm14, %v1290_v59, %v1305_v50  ;;  %v2846_v50 = vpop.f32.mrb[5].mxu0 }
 0x13a   : > { %v2293_v55 = vpop.eup %2292  ;;  %v432_v54 = vxor.u32 2147483648, %v2291_v6  ;;  %v1314_v39 = vsel %vm1302_vm14, %v1296_v63, %v1313_v26  ;;  %v2815_v57 = vadd.f32 %v2534_v29, %v2517_v16  ;;  %v1258_v49 = vand.u32 3, %v1257_v41 }
 0x13b   : > { %v429_v14 = vxor.u32 2147483648, %v2293_v55  ;;  %v2110_v44 = vadd.s32 4294967294, %v504_v12  ;;  %v1315_v32 = vsel %vm1301_vm1, %v1312_v61, %v1314_v39  ;;  %v1307_v63 = vsel %vm1301_vm1, %v1304_v35, %v1306_v36 }
 0x13c   : > { %v433_v5 = vsel %vm431_vm2, %v432_v54, %v2293_v55  ;;  %v2818_v56 = vmul.u32.u64.low %v2764_v7, %v1315_v32  ;;  %v2819_v40 = vmul.u32.u64.high %v2764_v7, %v1315_v32, %v2818_v56  ;;  %v1326_v9 = vadd.s32 1, %v2798_v31 }
 0x13d   : > { %v430_v59 = vsel %vm428_vm11, %v2291_v6, %v429_v14  ;;  %vm2111_vm3 = vcmp.lt.s32.totalorder %v2110_v44, 0  ;;  %v492_v29 = vadd.s32 %v2719_v46, %v2716_v53  ;;  %v543_v15 = vand.u32 2139095040, %v2815_v57 }
 0x13e   : > { %v434_v10 = vsel %vm427_vm13, %v430_v59, %v433_v5  ;;  %v507_v41 = vsel %vm2111_vm3, 0, %v2110_v44  ;;  %vm1256_vm4 = vweird.f32 %v2525_v21  ;;  %v523_v13 = vsel %vm438_vm0, %v522_v33, %v2753_v23 }
 0x13f   : > { %v435_v51 = vsel %vm424_vm15, nan, %v434_v10  ;;  %v508_v25 = vsub.s32 32, %v507_v41  ;;  %v512_v1 = vsub.s32 4294967266, %v507_v41  ;;  %v1323_v53 = vmul.u32 %v2764_v7, %v1307_v63 }
 0x140   : > { %1996 = vst [vmem:[%s2837_s10] sm:$0xff] %v435_v51  ;;  %vm1325_vm5 = vc.u32 %v2819_v40, %v2797_v28  ;;  %v540_v20 = vand.u32 2147483647, %v2815_v57  ;;  %v544_v46 = vshrl.u32 %v543_v15, 23  ;;  %v509_v48 = vshll.u32 %v2759_v22, %v507_v41 }
 0x141   : > { %v510_v38 = vshrl.u32 %v492_v29, %v508_v25  ;;  %v513_v60 = vadd.s32 127, %v512_v1  ;;  %v1327_v18 = vsel %vm1325_vm5, %v1326_v9, %v2798_v31  ;;  %v2295_v23 = vpop.eup %2294  ;;  %vm1263_vm6 = vcmp.eq.s32.totalorder %v1258_v49, 2 }
 0x142   : > { %vm2850_vm7 = vcmp.le.f32.partialorder %v436_v45, 0.7853982  ;;  %v1328_v8 = vadd.s32 %v1327_v18, %v1323_v53  ;;  %v2112_v52 = vadd.s32 4294967169, %v544_v46  ;;  %v2297_v27 = vpop.eup %2296  ;;  %v1264_v19 = vxor.u32 2147483648, %v2295_v23 }
 0x143   : > { %v511_v61 = vor.u32 %v510_v38, %v509_v48  ;;  %v514_v22 = vshll.u32 %v513_v60, 23  ;;  %v525_v26 = vsel %vm2850_vm7, 0, %v523_v13  ;;  %v1261_v31 = vxor.u32 2147483648, %v2297_v27 }
 0x144   : > { %v1329_v6 = vadd.s32 536870912, %v1328_v8  ;;  %v547_v12 = vand.u32 8388607, %v540_v20  ;;  %v550_v33 = vadd.s32 1, %v2112_v52  ;;  %vm1259_vm8 = vcmp.lt.s32.totalorder %v1258_v49, 2 }
 0x145   : > { %vm1260_vm9 = vcmp.eq.s32.totalorder %v1258_v49, 0  ;;  %v1265_v45 = vsel %vm1263_vm6, %v1264_v19, %v2297_v27  ;;  %v515_v55 = vor.u32 4788187, %v514_v22  ;;  %v529_v35 = vadd.s32 3, %v525_v26 }
 0x146   : > { %v1262_v54 = vsel %vm1260_vm9, %v2295_v23, %v1261_v31  ;;  %v2858_v36 = vshrl.u32 %v1329_v6, 30  ;;  %vm551_vm10 = vcmp.gt.s32.totalorder %v550_v33, 0  ;;  %v518_v44 = vcvt.s32.f32 %v511_v61 }
 0x147   : > { %v1266_v39 = vsel %vm1259_vm8, %v1262_v54, %v1265_v45  ;;  %v516_v14 = vand.u32 2147483647, %v515_v55  ;;  %v552_v32 = vsel %vm551_vm10, %v550_v33, 0  ;;  %v548_v59 = vor.u32 8388608, %v547_v12  ;;  %v2913_v54 = vpop.f32.mrb[5].mxu1 }
 0x148   : > { %v1267_v5 = vsel %vm1256_vm4, nan, %v1266_v39  ;;  %v1331_v56 = vshll.u32 %v2858_v36, 30  ;;  %v554_v49 = vand.u32 31, %v552_v32  ;;  %v2864_v9 = vand.u32 3, %v529_v35 }
 0x149   : > { %2004 = vst [vmem:[%s2837_s10 + $0x40] sm:$0xff] %v1267_v5  ;;  %v519_v63 = vmul.f32 %v518_v44, %v516_v14  ;;  %v1324_v41 = vadd.s32 %v2797_v28, %v2819_v40  ;;  %v2872_v51 = vadd.f32 %v2536_v30, %v2517_v16  ;;  %v2875_v25 = vshrl.u32 %v552_v32, 5 }
 0x14a   : > { %v2866_v10 = vsub.s32 %v1328_v8, %v1331_v56  ;;  %v555_v15 = vsub.s32 32, %v554_v49  ;;  %v2877_v1 = vshll.u32 %v548_v59, 8  ;;  %v2881_v13 = vadd.f32 %v2543_v37, %v2519_v17 }
 0x14b   : > { %v520_v29 = vxor.u32 2147483648, %v519_v63  ;;  %v557_v28 = vshll.u32 %v2419_v58, %v554_v49  ;;  %v560_v38 = vshll.u32 %v2420_v62, %v554_v49  ;;  %v1354_v60 = vsub.s32 4, %v2858_v36 }
 0x14c   : > { %v1334_v21 = vsub.s32 0, %v2866_v10  ;;  %v558_v40 = vshrl.u32 %v2420_v62, %v555_v15  ;;  %v561_v30 = vshrl.u32 %v2421_v0, %v555_v15  ;;  %v564_v37 = vshrl.u32 %v2422_v2, %v555_v15 }
 0x14d   : > { %v521_v53 = vsel %vm438_vm0, %v520_v29, %v519_v63  ;;  %v563_v18 = vshll.u32 %v2421_v0, %v554_v49  ;;  %v1375_v23 = vand.u32 2139095040, %v2872_v51  ;;  %v566_v7 = vshll.u32 %v2422_v2, %v554_v49 }
 0x14e   : > { %v524_v46 = vsel %vm2850_vm7, %v2528_v24, %v521_v53  ;;  %v2141_v48 = vmin.u32 %v1334_v21, %v2866_v10  ;;  %v559_v52 = vor.u32 %v558_v40, %v557_v28  ;;  %v562_v27 = vor.u32 %v561_v30, %v560_v38 }
 0x14f   : > { %2298 = vcosq.f32 %v524_v46  ;;  %v565_v19 = vor.u32 %v564_v37, %v563_v18  ;;  %v567_v61 = vshrl.u32 %v2423_v4, %v555_v15  ;;  %vm572_vm11 = vcmp.lt.s32.totalorder %v2875_v25, 1 }
 0x150   : > { %2300 = vsinq.f32 %v524_v46  ;;  %v1336_v8 = vclz %v2141_v48  ;;  %v569_v26 = vshll.u32 %v2423_v4, %v554_v49  ;;  %v570_v31 = vshrl.u32 %v2424_v11, %v555_v15 }
 0x151   : > { %vm573_vm12 = vcmp.lt.s32.totalorder %v2875_v25, 2  ;;  %vm535_vm13 = vcmp.eq.s32.totalorder %v2864_v9, 2  ;;  %v556_v6 = vshrl.u32 %v2419_v58, %v555_v15  ;;  %v568_v12 = vor.u32 %v567_v61, %v566_v7 }
 0x152   : > { %v2142_v22 = vadd.s32 4294967294, %v1336_v8  ;;  %vm574_vm14 = vcmp.lt.s32.totalorder %v2875_v25, 3  ;;  %vm575_vm15 = vcmp.lt.s32.totalorder %v2875_v25, 4  ;;  %vm532_vm0 = vcmp.eq.s32.totalorder %v2864_v9, 0 }
 0x153   : > { %vm1270_vm1 = vcmp.lt.s32.totalorder %v2546_v42, 0  ;;  %v571_v33 = vor.u32 %v570_v31, %v569_v26  ;;  %v577_v45 = vsel %vm575_vm15, %v565_v19, 2102212464  ;;  %v580_v55 = vsel %vm572_vm11, %v559_v52, %v562_v27 }
 0x154   : > { %vm2143_vm2 = vcmp.lt.s32.totalorder %v2142_v22, 0  ;;  %vm531_vm3 = vcmp.lt.s32.totalorder %v2864_v9, 2  ;;  %v576_v39 = vsel %vm572_vm11, %v556_v6, %v559_v52  ;;  %v581_v14 = vsel %vm575_vm15, %v568_v12, 920167782 }
 0x155   : > { %v1339_v35 = vsel %vm2143_vm2, 0, %v2142_v22  ;;  %v1376_v44 = vshrl.u32 %v1375_v23, 23  ;;  %vm528_vm4 = vweird.f32 %v2528_v24  ;;  %v582_v56 = vsel %vm574_vm14, %v565_v19, %v581_v14 }
 0x156   : > { %v1340_v32 = vsub.s32 32, %v1339_v35  ;;  %v1344_v5 = vsub.s32 4294967266, %v1339_v35  ;;  %v584_v59 = vsel %vm572_vm11, %v562_v27, %v565_v19  ;;  %vm2927_vm5 = vcmp.le.f32.partialorder %v1268_v43, 0.7853982 }
 0x157   : > { %v578_v49 = vsel %vm574_vm14, %v562_v27, %v577_v45  ;;  %v583_v29 = vsel %vm573_vm12, %v580_v55, %v582_v56  ;;  %v585_v15 = vsel %vm575_vm15, %v571_v33, 1326507024  ;;  %v2144_v21 = vadd.s32 4294967169, %v1376_v44 }
 0x158   : > { %v1341_v53 = vshll.u32 %v2866_v10, %v1339_v35  ;;  %v1342_v28 = vshrl.u32 %v1324_v41, %v1340_v32  ;;  %v1345_v40 = vadd.s32 127, %v1344_v5  ;;  %v586_v43 = vsel %vm574_vm14, %v568_v12, %v585_v15 }
 0x159   : > { %v2299_v30 = vpop.eup %2298  ;;  %v587_v46 = vsel %vm573_vm12, %v584_v59, %v586_v43  ;;  %v2943_v48 = vmul.u32.u64.low %v2877_v1, %v583_v29  ;;  %v2944_v38 = vmul.u32.u64.high %v2877_v1, %v583_v29, %v2943_v48  ;;  %v1382_v37 = vadd.s32 1, %v2144_v21 }
 0x15a   : > { %v2301_v18 = vpop.eup %2300  ;;  %v536_v23 = vxor.u32 2147483648, %v2299_v30  ;;  %v1343_v8 = vor.u32 %v1342_v28, %v1341_v53  ;;  %v1346_v52 = vshll.u32 %v1345_v40, 23  ;;  %v1372_v10 = vand.u32 2147483647, %v2872_v51 }
 0x15b   : > { %v533_v41 = vxor.u32 2147483648, %v2301_v18  ;;  %v2949_v27 = vmul.u32.u64.low %v2877_v1, %v587_v46  ;;  %v2950_v19 = vmul.u32.u64.high %v2877_v1, %v587_v46, %v2949_v27  ;;  %vm1383_vm6 = vcmp.gt.s32.totalorder %v1382_v37, 0 }
 0x15c   : > { %v537_v7 = vsel %vm535_vm13, %v536_v23, %v2301_v18  ;;  %v1347_v61 = vor.u32 4788187, %v1346_v52  ;;  %v579_v22 = vsel %vm573_vm12, %v576_v39, %v578_v49  ;;  %v1384_v26 = vsel %vm1383_vm6, %v1382_v37, 0 }
 0x15d   : > { %v534_v31 = vsel %vm532_vm0, %v2299_v30, %v533_v41  ;;  %v1355_v6 = vsel %vm1270_vm1, %v1354_v60, %v2858_v36  ;;  %v598_v12 = vadd.s32 1, %v2944_v38  ;;  %v1386_v33 = vand.u32 31, %v1384_v26 }
 0x15e   : > { %v538_v45 = vsel %vm531_vm3, %v534_v31, %v537_v7  ;;  %v1348_v55 = vand.u32 2147483647, %v1347_v61  ;;  %v1350_v35 = vcvt.s32.f32 %v1343_v8  ;;  %v1379_v25 = vand.u32 8388607, %v1372_v10 }
 0x15f   : > { %v539_v39 = vsel %vm528_vm4, nan, %v538_v45  ;;  %v595_v14 = vmul.u32 %v2877_v1, %v579_v22  ;;  %vm597_vm7 = vc.u32 %v2950_v19, %v2943_v48  ;;  %v1387_v36 = vsub.s32 32, %v1386_v33 }
 0x160   : > { %1997 = vst [vmem:[%s2837_s10 + $0x8] sm:$0xff] %v539_v39  ;;  %v1351_v60 = vmul.f32 %v1350_v35, %v1348_v55  ;;  %v1357_v9 = vsel %vm2927_vm5, 0, %v1355_v6  ;;  %v599_v44 = vsel %vm597_vm7, %v598_v12, %v2944_v38  ;;  %v1385_v32 = vshrl.u32 %v1384_v26, 5 }
 0x161   : > { %v600_v5 = vadd.s32 %v599_v44, %v595_v14  ;;  %v1389_v56 = vshll.u32 %v2419_v58, %v1386_v33  ;;  %v1390_v24 = vshrl.u32 %v2420_v62, %v1387_v36  ;;  %v1393_v59 = vshrl.u32 %v2421_v0, %v1387_v36 }
 0x162   : > { %v1352_v1 = vxor.u32 2147483648, %v1351_v60  ;;  %v1392_v49 = vshll.u32 %v2420_v62, %v1386_v33  ;;  %v1395_v29 = vshll.u32 %v2421_v0, %v1386_v33  ;;  %v1396_v15 = vshrl.u32 %v2422_v2, %v1387_v36 }
 0x163   : > { %v601_v21 = vadd.s32 536870912, %v600_v5  ;;  %v1391_v53 = vor.u32 %v1390_v24, %v1389_v56  ;;  %v1398_v28 = vshll.u32 %v2422_v2, %v1386_v33  ;;  %v1399_v40 = vshrl.u32 %v2423_v4, %v1387_v36 }
 0x164   : > { %v1353_v43 = vsel %vm1270_vm1, %v1352_v1, %v1351_v60  ;;  %v1394_v30 = vor.u32 %v1393_v59, %v1392_v49  ;;  %v1397_v46 = vor.u32 %v1396_v15, %v1395_v29  ;;  %v1402_v38 = vshrl.u32 %v2424_v11, %v1387_v36 }
 0x165   : > { %v1356_v37 = vsel %vm2927_vm5, %v2546_v42, %v1353_v43  ;;  %v602_v18 = vshrl.u32 %v601_v21, 30  ;;  %v1400_v23 = vor.u32 %v1399_v40, %v1398_v28  ;;  %v1401_v8 = vshll.u32 %v2423_v4, %v1386_v33 }
 0x166   : > { %2302 = vcosq.f32 %v1356_v37  ;;  %v1361_v52 = vadd.s32 3, %v1357_v9  ;;  %v1380_v41 = vor.u32 8388608, %v1379_v25  ;;  %vm1404_vm8 = vcmp.lt.s32.totalorder %v1385_v32, 1 }
 0x167   : > { %2304 = vsinq.f32 %v1356_v37  ;;  %v603_v27 = vshll.u32 %v602_v18, 30  ;;  %v1403_v7 = vor.u32 %v1402_v38, %v1401_v8  ;;  %vm1407_vm9 = vcmp.lt.s32.totalorder %v1385_v32, 4 }
 0x168   : > { %v1388_v61 = vshrl.u32 %v2419_v58, %v1387_v36  ;;  %vm1406_vm10 = vcmp.lt.s32.totalorder %v1385_v32, 3  ;;  %v1412_v22 = vsel %vm1404_vm8, %v1391_v53, %v1394_v30  ;;  %v1413_v63 = vsel %vm1407_vm9, %v1400_v23, 920167782 }
 0x169   : > { %v2995_v26 = vsub.s32 %v600_v5, %v603_v27  ;;  %vm1405_vm11 = vcmp.lt.s32.totalorder %v1385_v32, 2  ;;  %v1409_v31 = vsel %vm1407_vm9, %v1397_v46, 2102212464  ;;  %v1414_v6 = vsel %vm1406_vm10, %v1397_v46, %v1413_v63 }
 0x16a   : > { %v626_v12 = vsub.s32 4, %v602_v18  ;;  %v1415_v33 = vsel %vm1405_vm11, %v1412_v22, %v1414_v6  ;;  %v1416_v45 = vsel %vm1404_vm8, %v1394_v30, %v1397_v46  ;;  %v1420_v55 = vshll.u32 %v1380_v41, 8 }
 0x16b   : > { %v1362_v35 = vand.u32 3, %v1361_v52  ;;  %v606_v25 = vsub.s32 0, %v2995_v26  ;;  %v1408_v39 = vsel %vm1404_vm8, %v1388_v61, %v1391_v53  ;;  %v1417_v14 = vsel %vm1407_vm9, %v1403_v7, 1326507024 }
 0x16c   : > { %v1410_v36 = vsel %vm1406_vm10, %v1394_v30, %v1409_v31  ;;  %v1418_v60 = vsel %vm1406_vm10, %v1400_v23, %v1417_v14  ;;  %v3006_v9 = vmul.u32.u64.low %v1420_v55, %v1415_v33  ;;  %v3007_v44 = vmul.u32.u64.high %v1420_v55, %v1415_v33, %v3006_v9 }
 0x16d   : > { %vm1360_vm12 = vweird.f32 %v2546_v42  ;;  %vm542_vm13 = vcmp.lt.s32.totalorder %v2815_v57, 0  ;;  %v2113_v5 = vmin.u32 %v606_v25, %v2995_v26  ;;  %v1419_v56 = vsel %vm1405_vm11, %v1416_v45, %v1418_v60 }
 0x16e   : > { %v627_v24 = vsel %vm542_vm13, %v626_v12, %v602_v18  ;;  %v3015_v59 = vmul.u32.u64.low %v1420_v55, %v1419_v56  ;;  %v3016_v1 = vmul.u32.u64.high %v1420_v55, %v1419_v56, %v3015_v59  ;;  %v647_v49 = vand.u32 2139095040, %v2881_v13 }
 0x16f   : > { %vm3021_vm14 = vcmp.le.f32.partialorder %v540_v20, 0.7853982  ;;  %v608_v15 = vclz %v2113_v5  ;;  %v1411_v21 = vsel %vm1405_vm11, %v1408_v39, %v1410_v36  ;;  %v644_v53 = vand.u32 2147483647, %v2881_v13 }
 0x170   : > { %v2303_v28 = vpop.eup %2302  ;;  %vm1363_vm15 = vcmp.lt.s32.totalorder %v1362_v35, 2  ;;  %vm1364_vm0 = vcmp.eq.s32.totalorder %v1362_v35, 0  ;;  %v1430_v40 = vadd.s32 1, %v3007_v44  ;;  %v648_v43 = vshrl.u32 %v647_v49, 23 }
 0x171   : > { %v2305_v30 = vpop.eup %2304  ;;  %vm1367_vm1 = vcmp.eq.s32.totalorder %v1362_v35, 2  ;;  %v1368_v46 = vxor.u32 2147483648, %v2303_v28  ;;  %v2114_v38 = vadd.s32 4294967294, %v608_v15  ;;  %v629_v20 = vsel %vm3021_vm14, 0, %v627_v24 }
 0x172   : > { %v1365_v37 = vxor.u32 2147483648, %v2305_v30  ;;  %v1427_v18 = vmul.u32 %v1420_v55, %v1411_v21  ;;  %vm1429_vm2 = vc.u32 %v3016_v1, %v3006_v9  ;;  %v2116_v32 = vadd.s32 4294967169, %v648_v43  ;;  %v3040_v55 = vpop.f32.mrb[6].mxu0 }
 0x173   : > { %v1369_v23 = vsel %vm1367_vm1, %v1368_v46, %v2305_v30  ;;  %vm2115_vm3 = vcmp.lt.s32.totalorder %v2114_v38, 0  ;;  %v1431_v8 = vsel %vm1429_vm2, %v1430_v40, %v3007_v44  ;;  %v651_v52 = vand.u32 8388607, %v644_v53 }
 0x174   : > { %v1366_v41 = vsel %vm1364_vm0, %v2303_v28, %v1365_v37  ;;  %v611_v27 = vsel %vm2115_vm3, 0, %v2114_v38  ;;  %v1432_v7 = vadd.s32 %v1431_v8, %v1427_v18  ;;  %v654_v61 = vadd.s32 1, %v2116_v32 }
 0x175   : > { %v1370_v22 = vsel %vm1363_vm15, %v1366_v41, %v1369_v23  ;;  %v596_v63 = vadd.s32 %v2943_v48, %v2950_v19  ;;  %v612_v31 = vsub.s32 32, %v611_v27  ;;  %v616_v6 = vsub.s32 4294967266, %v611_v27 }
 0x176   : > { %v1371_v12 = vsel %vm1360_vm12, nan, %v1370_v22  ;;  %v633_v33 = vadd.s32 3, %v629_v20  ;;  %v1433_v45 = vadd.s32 536870912, %v1432_v7  ;;  %vm655_vm4 = vcmp.gt.s32.totalorder %v654_v61, 0 }
 0x177   : > { %2005 = vst [vmem:[%s2837_s10 + $0x48] sm:$0xff] %v1371_v12  ;;  %v613_v25 = vshll.u32 %v2995_v26, %v611_v27  ;;  %v614_v39 = vshrl.u32 %v596_v63, %v612_v31  ;;  %v617_v14 = vadd.s32 127, %v616_v6  ;;  %v656_v35 = vsel %vm655_vm4, %v654_v61, 0 }
 0x178   : > { %v1434_v36 = vshrl.u32 %v1433_v45, 30  ;;  %v652_v60 = vor.u32 8388608, %v651_v52  ;;  %v658_v44 = vand.u32 31, %v656_v35  ;;  %v3044_v5 = vand.u32 3, %v633_v33 }
 0x179   : > { %v615_v48 = vor.u32 %v614_v39, %v613_v25  ;;  %v618_v19 = vshll.u32 %v617_v14, 23  ;;  %vm1374_vm5 = vcmp.lt.s32.totalorder %v2872_v51, 0  ;;  %v1428_v59 = vadd.s32 %v3006_v9, %v3016_v1 }
 0x17a   : > { %v1435_v42 = vshll.u32 %v1434_v36, 30  ;;  %v659_v56 = vsub.s32 32, %v658_v44  ;;  %v3050_v26 = vadd.f32 %v2549_v47, %v2519_v17  ;;  %v3054_v49 = vadd.f32 %v2632_v3, %v2517_v16 }
 0x17b   : > { %v619_v24 = vor.u32 4788187, %v618_v19  ;;  %v657_v21 = vshrl.u32 %v656_v35, 5  ;;  %v3059_v40 = vshll.u32 %v652_v60, 8  ;;  %v622_v30 = vcvt.s32.f32 %v615_v48  ;;  %v3084_v48 = vpop.f32.mrb[6].mxu1 }
 0x17c   : > { %v3056_v15 = vsub.s32 %v1432_v7, %v1435_v42  ;;  %v662_v28 = vshrl.u32 %v2420_v62, %v659_v56  ;;  %v665_v46 = vshrl.u32 %v2421_v0, %v659_v56  ;;  %v668_v9 = vshrl.u32 %v2422_v2, %v659_v56 }
 0x17d   : > { %v620_v43 = vand.u32 2147483647, %v619_v24  ;;  %v1458_v1 = vsub.s32 4, %v1434_v36  ;;  %v661_v38 = vshll.u32 %v2419_v58, %v658_v44  ;;  %v664_v3 = vshll.u32 %v2420_v62, %v658_v44 }
 0x17e   : > { %v1438_v47 = vsub.s32 0, %v3056_v15  ;;  %v667_v37 = vshll.u32 %v2421_v0, %v658_v44  ;;  %v670_v18 = vshll.u32 %v2422_v2, %v658_v44  ;;  %v671_v32 = vshrl.u32 %v2423_v4, %v659_v56 }
 0x17f   : > { %v623_v20 = vmul.f32 %v622_v30, %v620_v43  ;;  %v663_v8 = vor.u32 %v662_v28, %v661_v38  ;;  %v666_v52 = vor.u32 %v665_v46, %v664_v3  ;;  %v674_v41 = vshrl.u32 %v2424_v11, %v659_v56 }
 0x180   : > { %v2145_v23 = vmin.u32 %v1438_v47, %v3056_v15  ;;  %v669_v7 = vor.u32 %v668_v9, %v667_v37  ;;  %v672_v61 = vor.u32 %v671_v32, %v670_v18  ;;  %v673_v22 = vshll.u32 %v2423_v4, %v658_v44 }
 0x181   : > { %v624_v27 = vxor.u32 2147483648, %v623_v20  ;;  %v1459_v31 = vsel %vm1374_vm5, %v1458_v1, %v1434_v36  ;;  %v660_v6 = vshrl.u32 %v2419_v58, %v659_v56  ;;  %v1479_v12 = vand.u32 2139095040, %v3050_v26 }
 0x182   : > { %v1440_v63 = vclz %v2145_v23  ;;  %v675_v45 = vor.u32 %v674_v41, %v673_v22  ;;  %vm676_vm6 = vcmp.lt.s32.totalorder %v657_v21, 1  ;;  %vm677_vm7 = vcmp.lt.s32.totalorder %v657_v21, 2 }
 0x183   : > { %v625_v33 = vsel %vm542_vm13, %v624_v27, %v623_v20  ;;  %vm678_vm8 = vcmp.lt.s32.totalorder %v657_v21, 3  ;;  %vm679_vm9 = vcmp.lt.s32.totalorder %v657_v21, 4  ;;  %v684_v35 = vsel %vm676_vm6, %v663_v8, %v666_v52 }
 0x184   : > { %v628_v25 = vsel %vm3021_vm14, %v2815_v57, %v625_v33  ;;  %v2146_v39 = vadd.s32 4294967294, %v1440_v63  ;;  %v681_v14 = vsel %vm679_vm9, %v669_v7, 2102212464  ;;  %v685_v36 = vsel %vm679_vm9, %v672_v61, 920167782 }
 0x185   : > { %2306 = vcosq.f32 %v628_v25  ;;  %v680_v60 = vsel %vm676_vm6, %v660_v6, %v663_v8  ;;  %v686_v44 = vsel %vm678_vm8, %v669_v7, %v685_v36  ;;  %v688_v42 = vsel %vm676_vm6, %v666_v52, %v669_v7 }
 0x186   : > { %2308 = vsinq.f32 %v628_v25  ;;  %vm2147_vm10 = vcmp.lt.s32.totalorder %v2146_v39, 0  ;;  %v687_v29 = vsel %vm677_vm7, %v684_v35, %v686_v44  ;;  %v689_v56 = vsel %vm679_vm9, %v675_v45, 1326507024 }
 0x187   : > { %v1443_v19 = vsel %vm2147_vm10, 0, %v2146_v39  ;;  %v682_v43 = vsel %vm678_vm8, %v666_v52, %v681_v14  ;;  %v690_v30 = vsel %vm678_vm8, %v672_v61, %v689_v56  ;;  %vm3103_vm11 = vcmp.le.f32.partialorder %v1372_v10, 0.7853982 }
 0x188   : > { %v1444_v24 = vsub.s32 32, %v1443_v19  ;;  %v1448_v28 = vsub.s32 4294967266, %v1443_v19  ;;  %v1445_v46 = vshll.u32 %v3056_v15, %v1443_v19  ;;  %v691_v9 = vsel %vm677_vm7, %v688_v42, %v690_v30 }
 0x189   : > { %v3093_v47 = vmul.u32.u64.low %v3059_v40, %v687_v29  ;;  %v3094_v1 = vmul.u32.u64.high %v3059_v40, %v687_v29, %v3093_v47  ;;  %v3098_v20 = vmul.u32.u64.low %v3059_v40, %v691_v9  ;;  %v3099_v37 = vmul.u32.u64.high %v3059_v40, %v691_v9, %v3098_v20 }
 0x18a   : > { %v1446_v38 = vshrl.u32 %v1428_v59, %v1444_v24  ;;  %v1449_v3 = vadd.s32 127, %v1448_v28  ;;  %v683_v15 = vsel %vm677_vm7, %v680_v60, %v682_v43  ;;  %v1480_v32 = vshrl.u32 %v1479_v12, 23 }
 0x18b   : > { %v1461_v52 = vsel %vm3103_vm11, 0, %v1459_v31  ;;  %v702_v59 = vadd.s32 1, %v3094_v1  ;;  %v1476_v41 = vand.u32 2147483647, %v3050_v26  ;;  %v751_v7 = vand.u32 2139095040, %v3054_v49 }
 0x18c   : > { %v1447_v23 = vor.u32 %v1446_v38, %v1445_v46  ;;  %v1450_v8 = vshll.u32 %v1449_v3, 23  ;;  %v2148_v27 = vadd.s32 4294967169, %v1480_v32  ;;  %vm636_vm12 = vcmp.eq.s32.totalorder %v3044_v5, 0 }
 0x18d   : > { %v699_v61 = vmul.u32 %v3059_v40, %v683_v15  ;;  %vm701_vm13 = vc.u32 %v3099_v37, %v3093_v47  ;;  %vm639_vm14 = vcmp.eq.s32.totalorder %v3044_v5, 2  ;;  %v1465_v22 = vadd.s32 3, %v1461_v52 }
 0x18e   : > { %v1451_v10 = vor.u32 4788187, %v1450_v8  ;;  %v703_v63 = vsel %vm701_vm13, %v702_v59, %v3094_v1  ;;  %v1486_v31 = vadd.s32 1, %v2148_v27  ;;  %v1454_v45 = vcvt.s32.f32 %v1447_v23 }
 0x18f   : > { %v2307_v21 = vpop.eup %2306  ;;  %v704_v25 = vadd.s32 %v703_v63, %v699_v61  ;;  %v1483_v14 = vand.u32 8388607, %v1476_v41  ;;  %v752_v40 = vshrl.u32 %v751_v7, 23  ;;  %vm632_vm0 = vweird.f32 %v2815_v57 }
 0x190   : > { %v2309_v6 = vpop.eup %2308  ;;  %v640_v12 = vxor.u32 2147483648, %v2307_v21  ;;  %v1452_v33 = vand.u32 2147483647, %v1451_v10  ;;  %vm1487_vm15 = vcmp.gt.s32.totalorder %v1486_v31, 0  ;;  %vm635_vm1 = vcmp.lt.s32.totalorder %v3044_v5, 2 }
 0x191   : > { %v637_v39 = vxor.u32 2147483648, %v2309_v6  ;;  %v705_v60 = vadd.s32 536870912, %v704_v25  ;;  %v1488_v44 = vsel %vm1487_vm15, %v1486_v31, 0  ;;  %v3125_v24 = vand.u32 3, %v1465_v22 }
 0x192   : > { %v641_v35 = vsel %vm639_vm14, %v640_v12, %v2309_v6  ;;  %v1455_v36 = vmul.f32 %v1454_v45, %v1452_v33  ;;  %v1490_v29 = vand.u32 31, %v1488_v44  ;;  %v1484_v30 = vor.u32 8388608, %v1483_v14 }
 0x193   : > { %v638_v19 = vsel %vm636_vm12, %v2307_v21, %v637_v39  ;;  %v3127_v28 = vshrl.u32 %v705_v60, 30  ;;  %v748_v9 = vand.u32 2147483647, %v3054_v49  ;;  %v2120_v38 = vadd.s32 4294967169, %v752_v40 }
 0x194   : > { %v642_v42 = vsel %vm635_vm1, %v638_v19, %v641_v35  ;;  %v1456_v56 = vxor.u32 2147483648, %v1455_v36  ;;  %v1491_v46 = vsub.s32 32, %v1490_v29  ;;  %v1493_v5 = vshll.u32 %v2419_v58, %v1490_v29 }
 0x195   : > { %v643_v43 = vsel %vm632_vm0, nan, %v642_v42  ;;  %v707_v1 = vshll.u32 %v3127_v28, 30  ;;  %v1496_v15 = vshll.u32 %v2420_v62, %v1490_v29  ;;  %v1499_v8 = vshll.u32 %v2421_v0, %v1490_v29 }
 0x196   : > { %1998 = vst [vmem:[%s2837_s10 + $0x10] sm:$0xff] %v643_v43  ;;  %v1457_v57 = vsel %vm1374_vm5, %v1456_v56, %v1455_v36  ;;  %v1494_v20 = vshrl.u32 %v2420_v62, %v1491_v46  ;;  %v1497_v32 = vshrl.u32 %v2421_v0, %v1491_v46  ;;  %v1500_v52 = vshrl.u32 %v2422_v2, %v1491_v46 }
 0x197   : > { %v1460_v3 = vsel %vm3103_vm11, %v2872_v51, %v1457_v57  ;;  %v3141_v23 = vsub.s32 %v704_v25, %v707_v1  ;;  %v700_v59 = vadd.s32 %v3093_v47, %v3099_v37  ;;  %v1489_v27 = vshrl.u32 %v1488_v44, 5 }
 0x198   : > { %2310 = vcosq.f32 %v1460_v3  ;;  %v3147_v18 = vshll.u32 %v1484_v30, 8  ;;  %v1495_v10 = vor.u32 %v1494_v20, %v1493_v5  ;;  %v1498_v61 = vor.u32 %v1497_v32, %v1496_v15 }
 0x199   : > { %2312 = vsinq.f32 %v1460_v3  ;;  %v710_v7 = vsub.s32 0, %v3141_v23  ;;  %v1501_v21 = vor.u32 %v1500_v52, %v1499_v8  ;;  %v1502_v22 = vshll.u32 %v2422_v2, %v1490_v29  ;;  %v3177_v8 = vpop.f32.mrb[7].mxu0 }
 0x19a   : > { %v1503_v63 = vshrl.u32 %v2423_v4, %v1491_v46  ;;  %v1505_v31 = vshll.u32 %v2423_v4, %v1490_v29  ;;  %v1506_v6 = vshrl.u32 %v2424_v11, %v1491_v46  ;;  %vm1471_vm2 = vcmp.eq.s32.totalorder %v3125_v24, 2 }
 0x19b   : > { %v2117_v47 = vmin.u32 %v710_v7, %v3141_v23  ;;  %v730_v37 = vsub.s32 4, %v3127_v28  ;;  %v3159_v12 = vand.u32 8388607, %v748_v9  ;;  %v758_v33 = vadd.s32 1, %v2120_v38 }
 0x19c   : > { %vm1468_vm3 = vcmp.eq.s32.totalorder %v3125_v24, 0  ;;  %v1492_v45 = vshrl.u32 %v2419_v58, %v1491_v46  ;;  %v1504_v25 = vor.u32 %v1503_v63, %v1502_v22  ;;  %v1507_v39 = vor.u32 %v1506_v6, %v1505_v31 }
 0x19d   : > { %vm1508_vm4 = vcmp.lt.s32.totalorder %v1489_v27, 1  ;;  %vm1467_vm5 = vcmp.lt.s32.totalorder %v3125_v24, 2  ;;  %vm646_vm6 = vcmp.lt.s32.totalorder %v2881_v13, 0  ;;  %v712_v14 = vclz %v2117_v47 }
 0x19e   : > { %vm1509_vm7 = vcmp.lt.s32.totalorder %v1489_v27, 2  ;;  %vm1510_vm8 = vcmp.lt.s32.totalorder %v1489_v27, 3  ;;  %vm1511_vm9 = vcmp.lt.s32.totalorder %v1489_v27, 4  ;;  %vm1464_vm10 = vweird.f32 %v2872_v51 }
 0x19f   : > { %v1513_v40 = vsel %vm1511_vm9, %v1501_v21, 2102212464  ;;  %v1516_v35 = vsel %vm1508_vm4, %v1495_v10, %v1498_v61  ;;  %v1517_v36 = vsel %vm1511_vm9, %v1504_v25, 920167782  ;;  %v1520_v60 = vsel %vm1508_vm4, %v1498_v61, %v1501_v21 }
 0x1a0   : > { %v2118_v44 = vadd.s32 4294967294, %v712_v14  ;;  %v1512_v19 = vsel %vm1508_vm4, %v1492_v45, %v1495_v10  ;;  %v1518_v29 = vsel %vm1510_vm8, %v1501_v21, %v1517_v36  ;;  %v1521_v42 = vsel %vm1511_vm9, %v1507_v39, 1326507024 }
 0x1a1   : > { %v1514_v56 = vsel %vm1510_vm8, %v1498_v61, %v1513_v40  ;;  %v1519_v43 = vsel %vm1509_vm7, %v1516_v35, %v1518_v29  ;;  %v1522_v30 = vsel %vm1510_vm8, %v1504_v25, %v1521_v42  ;;  %vm759_vm11 = vcmp.gt.s32.totalorder %v758_v33, 0 }
 0x1a2   : > { %v2311_v46 = vpop.eup %2310  ;;  %vm2119_vm12 = vcmp.lt.s32.totalorder %v2118_v44, 0  ;;  %v1523_v57 = vsel %vm1509_vm7, %v1520_v60, %v1522_v30  ;;  %v3169_v1 = vmul.u32.u64.low %v3147_v18, %v1519_v43  ;;  %v3170_v5 = vmul.u32.u64.high %v3147_v18, %v1519_v43, %v3169_v1 }
 0x1a3   : > { %v2313_v38 = vpop.eup %2312  ;;  %v1472_v3 = vxor.u32 2147483648, %v2311_v46  ;;  %v715_v20 = vsel %vm2119_vm12, 0, %v2118_v44  ;;  %v3174_v15 = vmul.u32.u64.low %v3147_v18, %v1523_v57  ;;  %v3175_v32 = vmul.u32.u64.high %v3147_v18, %v1523_v57, %v3174_v15 }
 0x1a4   : > { %v1469_v52 = vxor.u32 2147483648, %v2313_v38  ;;  %v716_v7 = vsub.s32 32, %v715_v20  ;;  %v720_v10 = vsub.s32 4294967266, %v715_v20  ;;  %v1515_v61 = vsel %vm1509_vm7, %v1512_v19, %v1514_v56 }
 0x1a5   : > { %v1473_v21 = vsel %vm1471_vm2, %v1472_v3, %v2313_v38  ;;  %v717_v22 = vshll.u32 %v3141_v23, %v715_v20  ;;  %v756_v63 = vor.u32 8388608, %v3159_v12  ;;  %v760_v31 = vsel %vm759_vm11, %v758_v33, 0 }
 0x1a6   : > { %v1470_v6 = vsel %vm1468_vm3, %v2311_v46, %v1469_v52  ;;  %v718_v47 = vshrl.u32 %v700_v59, %v716_v7  ;;  %v721_v45 = vadd.s32 127, %v720_v10  ;;  %v1534_v25 = vadd.s32 1, %v3170_v5 }
 0x1a7   : > { %v1474_v27 = vsel %vm1467_vm5, %v1470_v6, %v1473_v21  ;;  %v731_v39 = vsel %vm646_vm6, %v730_v37, %v3127_v28  ;;  %v1531_v23 = vmul.u32 %v3147_v18, %v1515_v61  ;;  %vm1533_vm13 = vc.u32 %v3175_v32, %v3169_v1 }
 0x1a8   : > { %v1475_v12 = vsel %vm1464_vm10, nan, %v1474_v27  ;;  %v719_v33 = vor.u32 %v718_v47, %v717_v22  ;;  %v722_v59 = vshll.u32 %v721_v45, 23  ;;  %v1535_v14 = vsel %vm1533_vm13, %v1534_v25, %v3170_v5 }
 0x1a9   : > { %2006 = vst [vmem:[%s2837_s10 + $0x50] sm:$0xff] %v1475_v12  ;;  %vm3202_vm14 = vcmp.le.f32.partialorder %v644_v53, 0.7853982  ;;  %v1536_v28 = vadd.s32 %v1535_v14, %v1531_v23  ;;  %v762_v37 = vand.u32 31, %v760_v31  ;;  %v3208_v35 = vshll.u32 %v756_v63, 8 }
 0x1aa   : > { %v723_v18 = vor.u32 4788187, %v722_v59  ;;  %v733_v40 = vsel %vm3202_vm14, 0, %v731_v39  ;;  %v726_v51 = vcvt.s32.f32 %v719_v33  ;;  %v3210_v60 = vshrl.u32 %v760_v31, 5 }
 0x1ab   : > { %v1537_v36 = vadd.s32 536870912, %v1536_v28  ;;  %v763_v44 = vsub.s32 32, %v762_v37  ;;  %v765_v29 = vshll.u32 %v2419_v58, %v762_v37  ;;  %v768_v53 = vshll.u32 %v2420_v62, %v762_v37 }
 0x1ac   : > { %v724_v19 = vand.u32 2147483647, %v723_v18  ;;  %v771_v42 = vshll.u32 %v2421_v0, %v762_v37  ;;  %v774_v46 = vshll.u32 %v2422_v2, %v762_v37  ;;  %v737_v20 = vadd.s32 3, %v733_v40 }
 0x1ad   : > { %v1538_v56 = vshrl.u32 %v1537_v36, 30  ;;  %v766_v43 = vshrl.u32 %v2420_v62, %v763_v44  ;;  %v769_v30 = vshrl.u32 %v2421_v0, %v763_v44  ;;  %v772_v5 = vshrl.u32 %v2422_v2, %v763_v44  ;;  %v3259_v36 = vpop.f32.mrb[7].mxu1 }
 0x1ae   : > { %v727_v57 = vmul.f32 %v726_v51, %v724_v19  ;;  %v775_v38 = vshrl.u32 %v2423_v4, %v763_v44  ;;  %v778_v3 = vshrl.u32 %v2424_v11, %v763_v44  ;;  %v777_v22 = vshll.u32 %v2423_v4, %v762_v37 }
 0x1af   : > { %v1539_v15 = vshll.u32 %v1538_v56, 30  ;;  %v767_v52 = vor.u32 %v766_v43, %v765_v29  ;;  %v770_v7 = vor.u32 %v769_v30, %v768_v53  ;;  %v773_v61 = vor.u32 %v772_v5, %v771_v42 }
 0x1b0   : > { %v728_v10 = vxor.u32 2147483648, %v727_v57  ;;  %v776_v21 = vor.u32 %v775_v38, %v774_v46  ;;  %vm780_vm15 = vcmp.lt.s32.totalorder %v3210_v60, 1  ;;  %vm783_vm0 = vcmp.lt.s32.totalorder %v3210_v60, 4 }
 0x1b1   : > { %v3222_v63 = vsub.s32 %v1536_v28, %v1539_v15  ;;  %v3228_v31 = vadd.f32 %v2712_v34, %v2517_v16  ;;  %v779_v47 = vor.u32 %v778_v3, %v777_v22  ;;  %v788_v45 = vsel %vm780_vm15, %v767_v52, %v770_v7 }
 0x1b2   : > { %v729_v6 = vsel %vm646_vm6, %v728_v10, %v727_v57  ;;  %v789_v25 = vsel %vm783_vm0, %v776_v21, 920167782  ;;  %vm781_vm1 = vcmp.lt.s32.totalorder %v3210_v60, 2  ;;  %vm782_vm2 = vcmp.lt.s32.totalorder %v3210_v60, 3 }
 0x1b3   : > { %v732_v27 = vsel %vm3202_vm14, %v2881_v13, %v729_v6  ;;  %v1542_v39 = vsub.s32 0, %v3222_v63  ;;  %v1562_v34 = vsub.s32 4, %v1538_v56  ;;  %v764_v23 = vshrl.u32 %v2419_v58, %v763_v44 }
 0x1b4   : > { %2314 = vcosq.f32 %v732_v27  ;;  %v790_v12 = vsel %vm782_vm2, %v773_v61, %v789_v25  ;;  %v785_v59 = vsel %vm783_vm0, %v773_v61, 2102212464  ;;  %v792_v24 = vsel %vm780_vm15, %v770_v7, %v773_v61 }
 0x1b5   : > { %2316 = vsinq.f32 %v732_v27  ;;  %v2149_v33 = vmin.u32 %v1542_v39, %v3222_v63  ;;  %v791_v14 = vsel %vm781_vm1, %v788_v45, %v790_v12  ;;  %v793_v28 = vsel %vm783_vm0, %v779_v47, 1326507024 }
 0x1b6   : > { %v3255_v37 = vmul.u32.u64.low %v3208_v35, %v791_v14  ;;  %v3256_v18 = vmul.u32.u64.high %v3208_v35, %v791_v14, %v3255_v37  ;;  %v738_v40 = vand.u32 3, %v737_v20  ;;  %v784_v44 = vsel %vm780_vm15, %v764_v23, %v767_v52 }
 0x1b7   : > { %v1544_v51 = vclz %v2149_v33  ;;  %v786_v19 = vsel %vm782_vm2, %v770_v7, %v785_v59  ;;  %v794_v29 = vsel %vm782_vm2, %v776_v21, %v793_v28  ;;  %v1583_v53 = vand.u32 2139095040, %v3228_v31 }
 0x1b8   : > { %vm3270_vm3 = vcmp.le.f32.partialorder %v1476_v41, 0.7853982  ;;  %vm1478_vm4 = vcmp.lt.s32.totalorder %v3050_v26, 0  ;;  %v795_v30 = vsel %vm781_vm1, %v792_v24, %v794_v29  ;;  %v1580_v38 = vand.u32 2147483647, %v3228_v31 }
 0x1b9   : > { %v2150_v43 = vadd.s32 4294967294, %v1544_v51  ;;  %v1563_v46 = vsel %vm1478_vm4, %v1562_v34, %v1538_v56  ;;  %v3280_v57 = vmul.u32.u64.low %v3208_v35, %v795_v30  ;;  %v3281_v5 = vmul.u32.u64.high %v3208_v35, %v795_v30, %v3280_v57 }
 0x1ba   : > { %vm736_vm5 = vweird.f32 %v2881_v13  ;;  %v787_v41 = vsel %vm781_vm1, %v784_v44, %v786_v19  ;;  %v806_v3 = vadd.s32 1, %v3256_v18  ;;  %v1584_v20 = vshrl.u32 %v1583_v53, 23 }
 0x1bb   : > { %vm2151_vm6 = vcmp.lt.s32.totalorder %v2150_v43, 0  ;;  %vm739_vm7 = vcmp.lt.s32.totalorder %v738_v40, 2  ;;  %vm743_vm8 = vcmp.eq.s32.totalorder %v738_v40, 2  ;;  %v1532_v56 = vadd.s32 %v3169_v1, %v3175_v32 }
 0x1bc   : > { %v1547_v15 = vsel %vm2151_vm6, 0, %v2150_v43  ;;  %v1565_v10 = vsel %vm3270_vm3, 0, %v1563_v46  ;;  %v2152_v61 = vadd.s32 4294967169, %v1584_v20  ;;  %v803_v60 = vmul.u32 %v3208_v35, %v787_v41 }
 0x1bd   : > { %v1548_v52 = vsub.s32 32, %v1547_v15  ;;  %v1552_v7 = vsub.s32 4294967266, %v1547_v15  ;;  %v1549_v22 = vshll.u32 %v3222_v63, %v1547_v15  ;;  %vm805_vm9 = vc.u32 %v3281_v5, %v3255_v37 }
 0x1be   : > { %v2315_v21 = vpop.eup %2314  ;;  %v1587_v6 = vand.u32 8388607, %v1580_v38  ;;  %v807_v25 = vsel %vm805_vm9, %v806_v3, %v3256_v18  ;;  %v1590_v34 = vadd.s32 1, %v2152_v61  ;;  %v3301_v63 = vadd.f32 %v2846_v50, %v2519_v17 }
 0x1bf   : > { %v2317_v47 = vpop.eup %2316  ;;  %v744_v1 = vxor.u32 2147483648, %v2315_v21  ;;  %v1550_v32 = vshrl.u32 %v1532_v56, %v1548_v52  ;;  %v1553_v45 = vadd.s32 127, %v1552_v7  ;;  %v808_v39 = vadd.s32 %v807_v25, %v803_v60 }
 0x1c0   : > { %v741_v27 = vxor.u32 2147483648, %v2317_v47  ;;  %vm740_vm10 = vcmp.eq.s32.totalorder %v738_v40, 0  ;;  %v1569_v59 = vadd.s32 3, %v1565_v10  ;;  %vm1591_vm11 = vcmp.gt.s32.totalorder %v1590_v34, 0 }
 0x1c1   : > { %v745_v35 = vsel %vm743_vm8, %v744_v1, %v2317_v47  ;;  %v1551_v23 = vor.u32 %v1550_v32, %v1549_v22  ;;  %v1554_v12 = vshll.u32 %v1553_v45, 23  ;;  %v809_v14 = vadd.s32 536870912, %v808_v39 }
 0x1c2   : > { %v742_v33 = vsel %vm740_vm10, %v2315_v21, %v741_v27  ;;  %v1588_v18 = vor.u32 8388608, %v1587_v6  ;;  %v1592_v51 = vsel %vm1591_vm11, %v1590_v34, 0  ;;  %v855_v29 = vand.u32 2139095040, %v3301_v63 }
 0x1c3   : > { %v746_v24 = vsel %vm739_vm7, %v742_v33, %v745_v35  ;;  %v1555_v28 = vor.u32 4788187, %v1554_v12  ;;  %v810_v50 = vshrl.u32 %v809_v14, 30  ;;  %v1594_v19 = vand.u32 31, %v1592_v51 }
 0x1c4   : > { %v747_v44 = vsel %vm736_vm5, nan, %v746_v24  ;;  %v1558_v43 = vcvt.s32.f32 %v1551_v23  ;;  %vm750_vm12 = vcmp.lt.s32.totalorder %v3054_v49, 0  ;;  %v3310_v30 = vand.u32 3, %v1569_v59 }
 0x1c5   : > { %1999 = vst [vmem:[%s2837_s10 + $0x18] sm:$0xff] %v747_v44  ;;  %v1556_v53 = vand.u32 2147483647, %v1555_v28  ;;  %vm3314_vm13 = vcmp.le.f32.partialorder %v748_v9, 0.7853982  ;;  %v811_v46 = vshll.u32 %v810_v50, 30  ;;  %v804_v3 = vadd.s32 %v3255_v37, %v3281_v5 }
 0x1c6   : > { %v1595_v13 = vsub.s32 32, %v1594_v19  ;;  %v852_v57 = vand.u32 2147483647, %v3301_v63  ;;  %v834_v20 = vsub.s32 4, %v810_v50  ;;  %v3321_v56 = vshll.u32 %v1588_v18, 8 }
 0x1c7   : > { %v1559_v41 = vmul.f32 %v1558_v43, %v1556_v53  ;;  %v3323_v15 = vsub.s32 %v808_v39, %v811_v46  ;;  %v3325_v52 = vshrl.u32 %v1592_v51, 5  ;;  %v856_v7 = vshrl.u32 %v855_v29, 23 }
 0x1c8   : > { %v1598_v9 = vshrl.u32 %v2420_v62, %v1595_v13  ;;  %v1597_v61 = vshll.u32 %v2419_v58, %v1594_v19  ;;  %v1601_v21 = vshrl.u32 %v2421_v0, %v1595_v13  ;;  %v1604_v22 = vshrl.u32 %v2422_v2, %v1595_v13 }
 0x1c9   : > { %v1560_v10 = vxor.u32 2147483648, %v1559_v41  ;;  %v814_v60 = vsub.s32 0, %v3323_v15  ;;  %v1600_v37 = vshll.u32 %v2420_v62, %v1594_v19  ;;  %v1603_v5 = vshll.u32 %v2421_v0, %v1594_v19 }
 0x1ca   : > { %v1607_v6 = vshrl.u32 %v2423_v4, %v1595_v13  ;;  %v835_v1 = vsel %vm750_vm12, %v834_v20, %v810_v50  ;;  %v1599_v32 = vor.u32 %v1598_v9, %v1597_v61  ;;  %v1606_v45 = vshll.u32 %v2422_v2, %v1594_v19 }
 0x1cb   : > { %v1561_v47 = vsel %vm1478_vm4, %v1560_v10, %v1559_v41  ;;  %v2121_v27 = vmin.u32 %v814_v60, %v3323_v15  ;;  %v1602_v39 = vor.u32 %v1601_v21, %v1600_v37  ;;  %v1605_v34 = vor.u32 %v1604_v22, %v1603_v5 }
 0x1cc   : > { %v1564_v25 = vsel %vm3270_vm3, %v3050_v26, %v1561_v47  ;;  %v1608_v35 = vor.u32 %v1607_v6, %v1606_v45  ;;  %v1609_v23 = vshll.u32 %v2423_v4, %v1594_v19  ;;  %v1610_v12 = vshrl.u32 %v2424_v11, %v1595_v13 }
 0x1cd   : > { %2318 = vcosq.f32 %v1564_v25  ;;  %v816_v33 = vclz %v2121_v27  ;;  %v2124_v59 = vadd.s32 4294967169, %v856_v7  ;;  %v3348_v14 = vand.u32 8388607, %v852_v57 }
 0x1ce   : > { %2320 = vsinq.f32 %v1564_v25  ;;  %v837_v42 = vsel %vm3314_vm13, 0, %v835_v1  ;;  %v1596_v24 = vshrl.u32 %v2419_v58, %v1595_v13  ;;  %v1611_v28 = vor.u32 %v1610_v12, %v1609_v23 }
 0x1cf   : > { %vm1612_vm14 = vcmp.lt.s32.totalorder %v3325_v52, 1  ;;  %v2122_v18 = vadd.s32 4294967294, %v816_v33  ;;  %vm1614_vm15 = vcmp.lt.s32.totalorder %v3325_v52, 3  ;;  %vm1615_vm0 = vcmp.lt.s32.totalorder %v3325_v52, 4 }
 0x1d0   : > { %v1620_v51 = vsel %vm1612_vm14, %v1599_v32, %v1602_v39  ;;  %v1617_v44 = vsel %vm1615_vm0, %v1605_v34, 2102212464  ;;  %v1621_v50 = vsel %vm1615_vm0, %v1608_v35, 920167782  ;;  %v1624_v19 = vsel %vm1612_vm14, %v1602_v39, %v1605_v34 }
 0x1d1   : > { %v1625_v29 = vsel %vm1615_vm0, %v1611_v28, 1326507024  ;;  %vm2123_vm1 = vcmp.lt.s32.totalorder %v2122_v18, 0  ;;  %vm1613_vm2 = vcmp.lt.s32.totalorder %v3325_v52, 2  ;;  %v1622_v53 = vsel %vm1614_vm15, %v1605_v34, %v1621_v50 }
 0x1d2   : > { %v1626_v43 = vsel %vm1614_vm15, %v1608_v35, %v1625_v29  ;;  %vm1571_vm3 = vcmp.lt.s32.totalorder %v3310_v30, 2  ;;  %v819_v46 = vsel %vm2123_vm1, 0, %v2122_v18  ;;  %v1616_v13 = vsel %vm1612_vm14, %v1596_v24, %v1599_v32 }
 0x1d3   : > { %v1623_v41 = vsel %vm1613_vm2, %v1620_v51, %v1622_v53  ;;  %v1627_v20 = vsel %vm1613_vm2, %v1624_v19, %v1626_v43  ;;  %vm1568_vm4 = vweird.f32 %v3050_v26  ;;  %v820_v9 = vsub.s32 32, %v819_v46 }
 0x1d4   : > { %v824_v7 = vsub.s32 4294967266, %v819_v46  ;;  %v1618_v10 = vsel %vm1614_vm15, %v1602_v39, %v1617_v44  ;;  %v862_v61 = vadd.s32 1, %v2124_v59  ;;  %v821_v5 = vshll.u32 %v3323_v15, %v819_v46 }
 0x1d5   : > { %v3370_v21 = vmul.u32.u64.low %v3321_v56, %v1627_v20  ;;  %v3371_v22 = vmul.u32.u64.high %v3321_v56, %v1627_v20, %v3370_v21  ;;  %v3374_v60 = vmul.u32.u64.low %v3321_v56, %v1623_v41  ;;  %v3375_v37 = vmul.u32.u64.high %v3321_v56, %v1623_v41, %v3374_v60 }
 0x1d6   : > { %v822_v6 = vshrl.u32 %v804_v3, %v820_v9  ;;  %v825_v47 = vadd.s32 127, %v824_v7  ;;  %vm863_vm5 = vcmp.gt.s32.totalorder %v862_v61, 0  ;;  %vm1572_vm6 = vcmp.eq.s32.totalorder %v3310_v30, 0 }
 0x1d7   : > { %v2319_v1 = vpop.eup %2318  ;;  %vm1575_vm7 = vcmp.eq.s32.totalorder %v3310_v30, 2  ;;  %v1619_v32 = vsel %vm1613_vm2, %v1616_v13, %v1618_v10  ;;  %v864_v45 = vsel %vm863_vm5, %v862_v61, 0  ;;  %v860_v35 = vor.u32 8388608, %v3348_v14 }
 0x1d8   : > { %v2321_v25 = vpop.eup %2320  ;;  %v1576_v27 = vxor.u32 2147483648, %v2319_v1  ;;  %v823_v39 = vor.u32 %v822_v6, %v821_v5  ;;  %v826_v34 = vshll.u32 %v825_v47, 23  ;;  %v841_v15 = vadd.s32 3, %v837_v42 }
 0x1d9   : > { %v1573_v23 = vxor.u32 2147483648, %v2321_v25  ;;  %vm1637_vm8 = vc.u32 %v3371_v22, %v3374_v60  ;;  %v1638_v3 = vadd.s32 1, %v3375_v37  ;;  %v1635_v52 = vmul.u32 %v3321_v56, %v1619_v32 }
 0x1da   : > { %v1577_v12 = vsel %vm1575_vm7, %v1576_v27, %v2321_v25  ;;  %v827_v33 = vor.u32 4788187, %v826_v34  ;;  %v866_v59 = vand.u32 31, %v864_v45  ;;  %v830_v28 = vcvt.s32.f32 %v823_v39 }
 0x1db   : > { %v1574_v24 = vsel %vm1572_vm6, %v2319_v1, %v1573_v23  ;;  %v1639_v18 = vsel %vm1637_vm8, %v1638_v3, %v3375_v37  ;;  %v3393_v14 = vadd.f32 %v2913_v54, %v2519_v17  ;;  %v3399_v19 = vand.u32 3, %v841_v15 }
 0x1dc   : > { %v1578_v42 = vsel %vm1571_vm3, %v1574_v24, %v1577_v12  ;;  %v828_v51 = vand.u32 2147483647, %v827_v33  ;;  %v1640_v44 = vadd.s32 %v1639_v18, %v1635_v52  ;;  %v867_v50 = vsub.s32 32, %v866_v59 }
 0x1dd   : > { %v1579_v56 = vsel %vm1568_vm4, nan, %v1578_v42  ;;  %v865_v29 = vshrl.u32 %v864_v45, 5  ;;  %v869_v53 = vshll.u32 %v2419_v58, %v866_v59  ;;  %v872_v13 = vshll.u32 %v2420_v62, %v866_v59 }
 0x1de   : > { %2007 = vst [vmem:[%s2837_s10 + $0x58] sm:$0xff] %v1579_v56  ;;  %v831_v43 = vmul.f32 %v830_v28, %v828_v51  ;;  %v1641_v46 = vadd.s32 536870912, %v1640_v44  ;;  %v870_v54 = vshrl.u32 %v2420_v62, %v867_v50  ;;  %v873_v30 = vshrl.u32 %v2421_v0, %v867_v50 }
 0x1df   : > { %v875_v41 = vshll.u32 %v2421_v0, %v866_v59  ;;  %v876_v20 = vshrl.u32 %v2422_v2, %v867_v50  ;;  %v879_v26 = vshrl.u32 %v2423_v4, %v867_v50  ;;  %v878_v61 = vshll.u32 %v2422_v2, %v866_v59 }
 0x1e0   : > { %v832_v9 = vxor.u32 2147483648, %v831_v43  ;;  %v1642_v7 = vshrl.u32 %v1641_v46, 30  ;;  %v871_v10 = vor.u32 %v870_v54, %v869_v53  ;;  %v874_v21 = vor.u32 %v873_v30, %v872_v13 }
 0x1e1   : > { %v877_v37 = vor.u32 %v876_v20, %v875_v41  ;;  %v881_v5 = vshll.u32 %v2423_v4, %v866_v59  ;;  %v882_v6 = vshrl.u32 %v2424_v11, %v867_v50  ;;  %v880_v32 = vor.u32 %v879_v26, %v878_v61 }
 0x1e2   : > { %v833_v47 = vsel %vm750_vm12, %v832_v9, %v831_v43  ;;  %v1643_v1 = vshll.u32 %v1642_v7, 30  ;;  %v3414_v45 = vshll.u32 %v860_v35, 8  ;;  %vm884_vm9 = vcmp.lt.s32.totalorder %v865_v29, 1 }
 0x1e3   : > { %v836_v25 = vsel %vm3314_vm13, %v3054_v49, %v833_v47  ;;  %v883_v27 = vor.u32 %v882_v6, %v881_v5  ;;  %v1687_v39 = vand.u32 2139095040, %v3393_v14  ;;  %vm885_vm10 = vcmp.lt.s32.totalorder %v865_v29, 2 }
 0x1e4   : > { %2322 = vcosq.f32 %v836_v25  ;;  %v3420_v34 = vsub.s32 %v1640_v44, %v1643_v1  ;;  %vm887_vm11 = vcmp.lt.s32.totalorder %v865_v29, 4  ;;  %v868_v23 = vshrl.u32 %v2419_v58, %v867_v50 }
 0x1e5   : > { %2324 = vsinq.f32 %v836_v25  ;;  %v889_v15 = vsel %vm887_vm11, %v877_v37, 2102212464  ;;  %v892_v35 = vsel %vm884_vm9, %v871_v10, %v874_v21  ;;  %v1666_v12 = vsub.s32 4, %v1642_v7 }
 0x1e6   : > { %v1646_v3 = vsub.s32 0, %v3420_v34  ;;  %vm886_vm12 = vcmp.lt.s32.totalorder %v865_v29, 3  ;;  %v893_v40 = vsel %vm887_vm11, %v880_v32, 920167782  ;;  %v888_v33 = vsel %vm884_vm9, %v868_v23, %v871_v10 }
 0x1e7   : > { %v894_v52 = vsel %vm886_vm12, %v877_v37, %v893_v40  ;;  %v896_v59 = vsel %vm884_vm9, %v874_v21, %v877_v37  ;;  %v897_v24 = vsel %vm887_vm11, %v883_v27, 1326507024  ;;  %v890_v18 = vsel %vm886_vm12, %v874_v21, %v889_v15 }
 0x1e8   : > { %v2153_v28 = vmin.u32 %v1646_v3, %v3420_v34  ;;  %v895_v42 = vsel %vm885_vm10, %v892_v35, %v894_v52  ;;  %v898_v51 = vsel %vm886_vm12, %v880_v32, %v897_v24  ;;  %vm1582_vm13 = vcmp.lt.s32.totalorder %v3228_v31, 0 }
 0x1e9   : > { %v899_v44 = vsel %vm885_vm10, %v896_v59, %v898_v51  ;;  %v3432_v50 = vmul.u32.u64.low %v3414_v45, %v895_v42  ;;  %v3433_v56 = vmul.u32.u64.high %v3414_v45, %v895_v42, %v3432_v50  ;;  %v1667_v43 = vsel %vm1582_vm13, %v1666_v12, %v1642_v7 }
 0x1ea   : > { %v1648_v53 = vclz %v2153_v28  ;;  %v1684_v46 = vand.u32 2147483647, %v3393_v14  ;;  %v891_v54 = vsel %vm885_vm10, %v888_v33, %v890_v18  ;;  %v1688_v41 = vshrl.u32 %v1687_v39, 23 }
 0x1eb   : > { %v3440_v13 = vmul.u32.u64.low %v3414_v45, %v899_v44  ;;  %v3441_v30 = vmul.u32.u64.high %v3414_v45, %v899_v44, %v3440_v13  ;;  %vm843_vm14 = vcmp.lt.s32.totalorder %v3399_v19, 2  ;;  %vm3446_vm15 = vcmp.le.f32.partialorder %v1580_v38, 0.7853982 }
 0x1ec   : > { %v2154_v26 = vadd.s32 4294967294, %v1648_v53  ;;  %v3452_v9 = vadd.f32 %v3040_v55, %v2517_v16  ;;  %vm844_vm0 = vcmp.eq.s32.totalorder %v3399_v19, 0  ;;  %vm847_vm1 = vcmp.eq.s32.totalorder %v3399_v19, 2 }
 0x1ed   : > { %v910_v29 = vadd.s32 1, %v3433_v56  ;;  %v2156_v7 = vadd.s32 4294967169, %v1688_v41  ;;  %v1636_v61 = vadd.s32 %v3374_v60, %v3371_v22  ;;  %v1669_v38 = vsel %vm3446_vm15, 0, %v1667_v43 }
 0x1ee   : > { %v2323_v10 = vpop.eup %2322  ;;  %vm2155_vm2 = vcmp.lt.s32.totalorder %v2154_v26, 0  ;;  %v907_v21 = vmul.u32 %v3414_v45, %v891_v54  ;;  %vm909_vm3 = vc.u32 %v3441_v30, %v3432_v50  ;;  %v1691_v6 = vand.u32 8388607, %v1684_v46 }
 0x1ef   : > { %v2325_v37 = vpop.eup %2324  ;;  %v848_v55 = vxor.u32 2147483648, %v2323_v10  ;;  %v1651_v5 = vsel %vm2155_vm2, 0, %v2154_v26  ;;  %v959_v25 = vand.u32 2139095040, %v3452_v9  ;;  %v911_v45 = vsel %vm909_vm3, %v910_v29, %v3433_v56 }
 0x1f0   : > { %v845_v47 = vxor.u32 2147483648, %v2325_v37  ;;  %v1652_v1 = vsub.s32 32, %v1651_v5  ;;  %v1656_v32 = vsub.s32 4294967266, %v1651_v5  ;;  %v1653_v60 = vshll.u32 %v3420_v34, %v1651_v5 }
 0x1f1   : > { %v849_v22 = vsel %vm847_vm1, %v848_v55, %v2325_v37  ;;  %v1694_v27 = vadd.s32 1, %v2156_v7  ;;  %v912_v35 = vadd.s32 %v911_v45, %v907_v21  ;;  %vm840_vm4 = vweird.f32 %v3054_v49 }
 0x1f2   : > { %v846_v39 = vsel %vm844_vm0, %v2323_v10, %v845_v47  ;;  %v1654_v23 = vshrl.u32 %v1636_v61, %v1652_v1  ;;  %v1657_v15 = vadd.s32 127, %v1656_v32  ;;  %v1673_v12 = vadd.s32 3, %v1669_v38 }
 0x1f3   : > { %v850_v3 = vsel %vm843_vm14, %v846_v39, %v849_v22  ;;  %vm1695_vm5 = vcmp.gt.s32.totalorder %v1694_v27, 0  ;;  %v913_v34 = vadd.s32 536870912, %v912_v35  ;;  %v1692_v59 = vor.u32 8388608, %v1691_v6 }
 0x1f4   : > { %v851_v40 = vsel %vm840_vm4, nan, %v850_v3  ;;  %v1655_v33 = vor.u32 %v1654_v23, %v1653_v60  ;;  %v1658_v52 = vshll.u32 %v1657_v15, 23  ;;  %v1696_v24 = vsel %vm1695_vm5, %v1694_v27, 0 }
 0x1f5   : > { %2000 = vst [vmem:[%s2837_s10 + $0x20] sm:$0xff] %v851_v40  ;;  %v914_v18 = vshrl.u32 %v913_v34, 30  ;;  %v960_v42 = vshrl.u32 %v959_v25, 23  ;;  %v1698_v51 = vand.u32 31, %v1696_v24  ;;  %v3476_v53 = vand.u32 3, %v1673_v12 }
 0x1f6   : > { %v1659_v28 = vor.u32 4788187, %v1658_v52  ;;  %v1662_v56 = vcvt.s32.f32 %v1655_v33  ;;  %vm854_vm6 = vcmp.lt.s32.totalorder %v3301_v63, 0  ;;  %v908_v19 = vadd.s32 %v3432_v50, %v3441_v30 }
 0x1f7   : > { %v915_v49 = vshll.u32 %v914_v18, 30  ;;  %v1699_v43 = vsub.s32 32, %v1698_v51  ;;  %v3480_v54 = vshll.u32 %v1692_v59, 8  ;;  %v956_v13 = vand.u32 2147483647, %v3452_v9 }
 0x1f8   : > { %v1660_v44 = vand.u32 2147483647, %v1659_v28  ;;  %v1697_v29 = vshrl.u32 %v1696_v24, 5  ;;  %v2128_v7 = vadd.s32 4294967169, %v960_v42  ;;  %v938_v10 = vsub.s32 4, %v914_v18 }
 0x1f9   : > { %v3483_v26 = vsub.s32 %v912_v35, %v915_v49  ;;  %v1701_v61 = vshll.u32 %v2419_v58, %v1698_v51  ;;  %v1702_v38 = vshrl.u32 %v2420_v62, %v1699_v43  ;;  %v1705_v21 = vshrl.u32 %v2421_v0, %v1699_v43 }
 0x1fa   : > { %v1663_v41 = vmul.f32 %v1662_v56, %v1660_v44  ;;  %vm3490_vm7 = vcmp.le.f32.partialorder %v852_v57, 0.7853982  ;;  %v1704_v55 = vshll.u32 %v2420_v62, %v1698_v51  ;;  %v1708_v5 = vshrl.u32 %v2422_v2, %v1699_v43 }
 0x1fb   : > { %v918_v30 = vsub.s32 0, %v3483_v26  ;;  %v1703_v6 = vor.u32 %v1702_v38, %v1701_v61  ;;  %v1707_v47 = vshll.u32 %v2421_v0, %v1698_v51  ;;  %v1710_v1 = vshll.u32 %v2422_v2, %v1698_v51 }
 0x1fc   : > { %v1664_v37 = vxor.u32 2147483648, %v1663_v41  ;;  %v1711_v32 = vshrl.u32 %v2423_v4, %v1699_v43  ;;  %v1706_v22 = vor.u32 %v1705_v21, %v1704_v55  ;;  %v1713_v60 = vshll.u32 %v2423_v4, %v1698_v51 }
 0x1fd   : > { %v2125_v57 = vmin.u32 %v918_v30, %v3483_v26  ;;  %v1709_v27 = vor.u32 %v1708_v5, %v1707_v47  ;;  %v1714_v23 = vshrl.u32 %v2424_v11, %v1699_v43  ;;  %vm1716_vm8 = vcmp.lt.s32.totalorder %v1697_v29, 1 }
 0x1fe   : > { %v1665_v25 = vsel %vm1582_vm13, %v1664_v37, %v1663_v41  ;;  %v1712_v39 = vor.u32 %v1711_v32, %v1710_v1  ;;  %v966_v35 = vadd.s32 1, %v2128_v7  ;;  %v939_v3 = vsel %vm854_vm6, %v938_v10, %v914_v18 }
 0x1ff   : > { %v1668_v45 = vsel %vm3446_vm15, %v3228_v31, %v1665_v25  ;;  %v920_v15 = vclz %v2125_v57  ;;  %v1700_v12 = vshrl.u32 %v2419_v58, %v1699_v43  ;;  %v1715_v40 = vor.u32 %v1714_v23, %v1713_v60 }
 0x200   : > { %2326 = vcosq.f32 %v1668_v45  ;;  %vm1718_vm9 = vcmp.lt.s32.totalorder %v1697_v29, 3  ;;  %vm1719_vm10 = vcmp.lt.s32.totalorder %v1697_v29, 4  ;;  %v1724_v20 = vsel %vm1716_vm8, %v1703_v6, %v1706_v22 }
 0x201   : > { %2328 = vsinq.f32 %v1668_v45  ;;  %v2126_v33 = vadd.s32 4294967294, %v920_v15  ;;  %v1721_v52 = vsel %vm1719_vm10, %v1709_v27, 2102212464  ;;  %v1725_v34 = vsel %vm1719_vm10, %v1712_v39, 920167782 }
 0x202   : > { %v1728_v59 = vsel %vm1716_vm8, %v1706_v22, %v1709_v27  ;;  %v1729_v24 = vsel %vm1719_vm10, %v1715_v40, 1326507024  ;;  %vm1717_vm12 = vcmp.lt.s32.totalorder %v1697_v29, 2  ;;  %v1726_v28 = vsel %vm1718_vm9, %v1709_v27, %v1725_v34 }
 0x203   : > { %vm2127_vm11 = vcmp.lt.s32.totalorder %v2126_v33, 0  ;;  %v1730_v42 = vsel %vm1718_vm9, %v1712_v39, %v1729_v24  ;;  %v941_v51 = vsel %vm3490_vm7, 0, %v939_v3  ;;  %v1727_v44 = vsel %vm1717_vm12, %v1724_v20, %v1726_v28 }
 0x204   : > { %v923_v18 = vsel %vm2127_vm11, 0, %v2126_v33  ;;  %v1731_v56 = vsel %vm1717_vm12, %v1728_v59, %v1730_v42  ;;  %vm1675_vm13 = vcmp.lt.s32.totalorder %v3476_v53, 2  ;;  %v1720_v41 = vsel %vm1716_vm8, %v1700_v12, %v1703_v6 }
 0x205   : > { %v924_v49 = vsub.s32 32, %v923_v18  ;;  %v928_v43 = vsub.s32 4294967266, %v923_v18  ;;  %v1722_v7 = vsel %vm1718_vm9, %v1706_v22, %v1721_v52  ;;  %vm1672_vm14 = vweird.f32 %v3228_v31 }
 0x206   : > { %v3524_v10 = vmul.u32.u64.low %v3480_v54, %v1731_v56  ;;  %v3525_v61 = vmul.u32.u64.high %v3480_v54, %v1731_v56, %v3524_v10  ;;  %v3528_v38 = vmul.u32.u64.low %v3480_v54, %v1727_v44  ;;  %v3529_v21 = vmul.u32.u64.high %v3480_v54, %v1727_v44, %v3528_v38 }
 0x207   : > { %v925_v37 = vshll.u32 %v3483_v26, %v923_v18  ;;  %v926_v30 = vshrl.u32 %v908_v19, %v924_v49  ;;  %v929_v55 = vadd.s32 127, %v928_v43  ;;  %vm967_vm15 = vcmp.gt.s32.totalorder %v966_v35, 0 }
 0x208   : > { %vm1676_vm0 = vcmp.eq.s32.totalorder %v3476_v53, 0  ;;  %v1723_v5 = vsel %vm1717_vm12, %v1720_v41, %v1722_v7  ;;  %v963_v6 = vand.u32 8388607, %v956_v13  ;;  %v968_v47 = vsel %vm967_vm15, %v966_v35, 0 }
 0x209   : > { %vm1679_vm1 = vcmp.eq.s32.totalorder %v3476_v53, 2  ;;  %v927_v32 = vor.u32 %v926_v30, %v925_v37  ;;  %v930_v25 = vshll.u32 %v929_v55, 23  ;;  %v970_v57 = vand.u32 31, %v968_v47 }
 0x20a   : > { %v2327_v1 = vpop.eup %2326  ;;  %v945_v26 = vadd.s32 3, %v941_v51  ;;  %vm1741_vm2 = vc.u32 %v3525_v61, %v3528_v38  ;;  %v1742_v19 = vadd.s32 1, %v3529_v21  ;;  %v1739_v27 = vmul.u32 %v3480_v54, %v1723_v5 }
 0x20b   : > { %v2329_v22 = vpop.eup %2328  ;;  %v1680_v60 = vxor.u32 2147483648, %v2327_v1  ;;  %v931_v45 = vor.u32 4788187, %v930_v25  ;;  %v971_v39 = vsub.s32 32, %v970_v57  ;;  %v964_v35 = vor.u32 8388608, %v963_v6 }
 0x20c   : > { %v1677_v29 = vxor.u32 2147483648, %v2329_v22  ;;  %v1743_v15 = vsel %vm1741_vm2, %v1742_v19, %v3529_v21  ;;  %v3545_v3 = vadd.f32 %v3084_v48, %v2517_v16  ;;  %v934_v33 = vcvt.s32.f32 %v927_v32 }
 0x20d   : > { %v1681_v23 = vsel %vm1679_vm1, %v1680_v60, %v2329_v22  ;;  %v932_v40 = vand.u32 2147483647, %v931_v45  ;;  %v1744_v20 = vadd.s32 %v1743_v15, %v1739_v27  ;;  %v3551_v54 = vand.u32 3, %v945_v26 }
 0x20e   : > { %v1678_v12 = vsel %vm1676_vm0, %v2327_v1, %v1677_v29  ;;  %v974_v34 = vshrl.u32 %v2420_v62, %v971_v39  ;;  %v977_v59 = vshrl.u32 %v2421_v0, %v971_v39  ;;  %v969_v28 = vshrl.u32 %v968_v47, 5 }
 0x20f   : > { %v1682_v52 = vsel %vm1675_vm13, %v1678_v12, %v1681_v23  ;;  %v935_v16 = vmul.f32 %v934_v33, %v932_v40  ;;  %v1745_v48 = vadd.s32 536870912, %v1744_v20  ;;  %vm1686_vm3 = vcmp.lt.s32.totalorder %v3393_v14, 0 }
 0x210   : > { %v1683_v24 = vsel %vm1672_vm14, nan, %v1682_v52  ;;  %v973_v42 = vshll.u32 %v2419_v58, %v970_v57  ;;  %v976_v53 = vshll.u32 %v2420_v62, %v970_v57  ;;  %v980_v18 = vshrl.u32 %v2422_v2, %v971_v39 }
 0x211   : > { %2008 = vst [vmem:[%s2837_s10 + $0x60] sm:$0xff] %v1683_v24  ;;  %v983_v51 = vshrl.u32 %v2423_v4, %v971_v39  ;;  %v936_v44 = vxor.u32 2147483648, %v935_v16  ;;  %v1746_v56 = vshrl.u32 %v1745_v48, 30  ;;  %v979_v49 = vshll.u32 %v2421_v0, %v970_v57 }
 0x212   : > { %v982_v31 = vshll.u32 %v2422_v2, %v970_v57  ;;  %v975_v43 = vor.u32 %v974_v34, %v973_v42  ;;  %v978_v41 = vor.u32 %v977_v59, %v976_v53  ;;  %v985_v7 = vshll.u32 %v2423_v4, %v970_v57 }
 0x213   : > { %v986_v10 = vshrl.u32 %v2424_v11, %v971_v39  ;;  %v937_v21 = vsel %vm854_vm6, %v936_v44, %v935_v16  ;;  %v1747_v37 = vshll.u32 %v1746_v56, 30  ;;  %v3569_v55 = vshll.u32 %v964_v35, 8 }
 0x214   : > { %v984_v30 = vor.u32 %v983_v51, %v982_v31  ;;  %v940_v5 = vsel %vm3490_vm7, %v3301_v63, %v937_v21  ;;  %v981_v6 = vor.u32 %v980_v18, %v979_v49  ;;  %v1791_v1 = vand.u32 2139095040, %v3545_v3 }
 0x215   : > { %v987_v47 = vor.u32 %v986_v10, %v985_v7  ;;  %2330 = vcosq.f32 %v940_v5  ;;  %v3575_v32 = vsub.s32 %v1744_v20, %v1747_v37  ;;  %v1770_v25 = vsub.s32 4, %v1746_v56 }
 0x216   : > { %vm988_vm4 = vcmp.lt.s32.totalorder %v969_v28, 1  ;;  %2332 = vsinq.f32 %v940_v5  ;;  %v972_v57 = vshrl.u32 %v2419_v58, %v971_v39  ;;  %vm991_vm5 = vcmp.lt.s32.totalorder %v969_v28, 4 }
 0x217   : > { %v996_v22 = vsel %vm988_vm4, %v975_v43, %v978_v41  ;;  %v1750_v60 = vsub.s32 0, %v3575_v32  ;;  %vm989_vm6 = vcmp.lt.s32.totalorder %v969_v28, 2  ;;  %vm990_vm8 = vcmp.lt.s32.totalorder %v969_v28, 3 }
 0x218   : > { %v997_v50 = vsel %vm991_vm5, %v984_v30, 920167782  ;;  %v993_v26 = vsel %vm991_vm5, %v981_v6, 2102212464  ;;  %v1000_v29 = vsel %vm988_vm4, %v978_v41, %v981_v6  ;;  %v1001_v45 = vsel %vm991_vm5, %v987_v47, 1326507024 }
 0x219   : > { %v998_v19 = vsel %vm990_vm8, %v981_v6, %v997_v50  ;;  %v2157_v27 = vmin.u32 %v1750_v60, %v3575_v32  ;;  %v1771_v23 = vsel %vm1686_vm3, %v1770_v25, %v1746_v56  ;;  %v1002_v15 = vsel %vm990_vm8, %v984_v30, %v1001_v45 }
 0x21a   : > { %v999_v39 = vsel %vm989_vm6, %v996_v22, %v998_v19  ;;  %v1003_v35 = vsel %vm989_vm6, %v1000_v29, %v1002_v15  ;;  %v1792_v33 = vshrl.u32 %v1791_v1, 23  ;;  %v992_v52 = vsel %vm988_vm4, %v972_v57, %v975_v43 }
 0x21b   : > { %v3587_v12 = vmul.u32.u64.low %v3569_v55, %v999_v39  ;;  %v3588_v40 = vmul.u32.u64.high %v3569_v55, %v999_v39, %v3587_v12  ;;  %v1752_v20 = vclz %v2157_v27  ;;  %v994_v34 = vsel %vm990_vm8, %v978_v41, %v993_v26 }
 0x21c   : > { %vm944_vm7 = vweird.f32 %v3301_v63  ;;  %vm3594_vm9 = vcmp.le.f32.partialorder %v1684_v46, 0.7853982  ;;  %v3599_v24 = vmul.u32.u64.low %v3569_v55, %v1003_v35  ;;  %v3600_v16 = vmul.u32.u64.high %v3569_v55, %v1003_v35, %v3599_v24 }
 0x21d   : > { %v2160_v48 = vadd.s32 4294967169, %v1792_v33  ;;  %v2158_v42 = vadd.s32 4294967294, %v1752_v20  ;;  %v1773_v53 = vsel %vm3594_vm9, 0, %v1771_v23  ;;  %v1788_v18 = vand.u32 2147483647, %v3545_v3 }
 0x21e   : > { %v3607_v51 = vadd.f32 %v3177_v8, %v2519_v17  ;;  %vm947_vm10 = vcmp.lt.s32.totalorder %v3551_v54, 2  ;;  %v995_v46 = vsel %vm989_vm6, %v992_v52, %v994_v34  ;;  %v1014_v44 = vadd.s32 1, %v3588_v40 }
 0x21f   : > { %v1798_v56 = vadd.s32 1, %v2160_v48  ;;  %v2331_v49 = vpop.eup %2330  ;;  %vm948_vm11 = vcmp.eq.s32.totalorder %v3551_v54, 0  ;;  %vm951_vm12 = vcmp.eq.s32.totalorder %v3551_v54, 2  ;;  %v1740_v31 = vadd.s32 %v3528_v38, %v3525_v61 }
 0x220   : > { %vm2159_vm13 = vcmp.lt.s32.totalorder %v2158_v42, 0  ;;  %v2333_v43 = vpop.eup %2332  ;;  %v952_v41 = vxor.u32 2147483648, %v2331_v49  ;;  %v1777_v7 = vadd.s32 3, %v1773_v53  ;;  %vm1013_vm14 = vc.u32 %v3600_v16, %v3587_v12 }
 0x221   : > { %v1755_v8 = vsel %vm2159_vm13, 0, %v2158_v42  ;;  %v949_v28 = vxor.u32 2147483648, %v2333_v43  ;;  %v1011_v37 = vmul.u32 %v3569_v55, %v995_v46  ;;  %v1015_v6 = vsel %vm1013_vm14, %v1014_v44, %v3588_v40 }
 0x222   : > { %v1756_v10 = vsub.s32 32, %v1755_v8  ;;  %v1760_v21 = vsub.s32 4294967266, %v1755_v8  ;;  %v953_v30 = vsel %vm951_vm12, %v952_v41, %v2333_v43  ;;  %v1757_v5 = vshll.u32 %v3575_v32, %v1755_v8 }
 0x223   : > { %vm1799_vm15 = vcmp.gt.s32.totalorder %v1798_v56, 0  ;;  %v950_v61 = vsel %vm948_vm11, %v2331_v49, %v949_v28  ;;  %v1016_v1 = vadd.s32 %v1015_v6, %v1011_v37  ;;  %v1795_v57 = vand.u32 8388607, %v1788_v18 }
 0x224   : > { %v1758_v38 = vshrl.u32 %v1740_v31, %v1756_v10  ;;  %v1761_v47 = vadd.s32 127, %v1760_v21  ;;  %v954_v25 = vsel %vm947_vm10, %v950_v61, %v953_v30  ;;  %v1800_v55 = vsel %vm1799_vm15, %v1798_v56, 0 }
 0x225   : > { %v1060_v22 = vand.u32 2147483647, %v3607_v51  ;;  %v955_v32 = vsel %vm944_vm7, nan, %v954_v25  ;;  %v1017_v26 = vadd.s32 536870912, %v1016_v1  ;;  %v1802_v19 = vand.u32 31, %v1800_v55 }
 0x226   : > { %v1759_v60 = vor.u32 %v1758_v38, %v1757_v5  ;;  %v1762_v50 = vshll.u32 %v1761_v47, 23  ;;  %2001 = vst [vmem:[%s2837_s10 + $0x28] sm:$0xff] %v955_v32  ;;  %v3632_v27 = vand.u32 3, %v1777_v7  ;;  %v1796_v54 = vor.u32 8388608, %v1795_v57 }
 0x227   : > { %v3630_v45 = vshrl.u32 %v1017_v26, 30  ;;  %v1803_v23 = vsub.s32 32, %v1802_v19  ;;  %v1063_v39 = vand.u32 2139095040, %v3607_v51  ;;  %v3638_v63 = vand.u32 8388607, %v1060_v22 }
 0x228   : > { %v1763_v29 = vor.u32 4788187, %v1762_v50  ;;  %v1766_v35 = vcvt.s32.f32 %v1759_v60  ;;  %v1012_v33 = vadd.s32 %v3587_v12, %v3600_v16  ;;  %v1805_v42 = vshll.u32 %v2419_v58, %v1802_v19 }
 0x229   : > { %v1019_v40 = vshll.u32 %v3630_v45, 30  ;;  %v1806_v20 = vshrl.u32 %v2420_v62, %v1803_v23  ;;  %v1809_v52 = vshrl.u32 %v2421_v0, %v1803_v23  ;;  %v1812_v34 = vshrl.u32 %v2422_v2, %v1803_v23 }
 0x22a   : > { %v1764_v15 = vand.u32 2147483647, %v1763_v29  ;;  %v1815_v53 = vshrl.u32 %v2423_v4, %v1803_v23  ;;  %v1801_v46 = vshrl.u32 %v1800_v55, 5  ;;  %v1808_v44 = vshll.u32 %v2420_v62, %v1802_v19 }
 0x22b   : > { %v3644_v48 = vsub.s32 %v1016_v1, %v1019_v40  ;;  %v1811_v56 = vshll.u32 %v2421_v0, %v1802_v19  ;;  %v1064_v49 = vshrl.u32 %v1063_v39, 23  ;;  %v1807_v31 = vor.u32 %v1806_v20, %v1805_v42 }
 0x22c   : > { %v1767_v24 = vmul.f32 %v1766_v35, %v1764_v15  ;;  %v1814_v43 = vshll.u32 %v2422_v2, %v1802_v19  ;;  %v1810_v41 = vor.u32 %v1809_v52, %v1808_v44  ;;  %v1817_v7 = vshll.u32 %v2423_v4, %v1802_v19 }
 0x22d   : > { %v1022_v16 = vsub.s32 0, %v3644_v48  ;;  %v1813_v8 = vor.u32 %v1812_v34, %v1811_v56  ;;  %v1818_v28 = vshrl.u32 %v2424_v11, %v1803_v23  ;;  %v3657_v30 = vshll.u32 %v1796_v54, 8 }
 0x22e   : > { %v1768_v12 = vxor.u32 2147483648, %v1767_v24  ;;  %v1816_v37 = vor.u32 %v1815_v53, %v1814_v43  ;;  %v1804_v6 = vshrl.u32 %v2419_v58, %v1803_v23  ;;  %v2132_v38 = vadd.s32 4294967169, %v1064_v49 }
 0x22f   : > { %v2129_v21 = vmin.u32 %v1022_v16, %v3644_v48  ;;  %v1819_v61 = vor.u32 %v1818_v28, %v1817_v7  ;;  %vm1820_vm0 = vcmp.lt.s32.totalorder %v1801_v46, 1  ;;  %vm1823_vm1 = vcmp.lt.s32.totalorder %v1801_v46, 4 }
 0x230   : > { %v1769_v10 = vsel %vm1686_vm3, %v1768_v12, %v1767_v24  ;;  %vm958_vm2 = vcmp.lt.s32.totalorder %v3452_v9, 0  ;;  %vm1821_vm3 = vcmp.lt.s32.totalorder %v1801_v46, 2  ;;  %v1825_v1 = vsel %vm1823_vm1, %v1813_v8, 2102212464 }
 0x231   : > { %v1772_v5 = vsel %vm3594_vm9, %v3393_v14, %v1769_v10  ;;  %v1024_v47 = vclz %v2129_v21  ;;  %v1828_v25 = vsel %vm1820_vm0, %v1807_v31, %v1810_v41  ;;  %vm1822_vm4 = vcmp.lt.s32.totalorder %v1801_v46, 3 }
 0x232   : > { %2334 = vcosq.f32 %v1772_v5  ;;  %v1829_v55 = vsel %vm1823_vm1, %v1816_v37, 920167782  ;;  %v1832_v32 = vsel %vm1820_vm0, %v1810_v41, %v1813_v8  ;;  %v1824_v59 = vsel %vm1820_vm0, %v1804_v6, %v1807_v31 }
 0x233   : > { %2336 = vsinq.f32 %v1772_v5  ;;  %v2130_v57 = vadd.s32 4294967294, %v1024_v47  ;;  %v1830_v60 = vsel %vm1822_vm4, %v1813_v8, %v1829_v55  ;;  %v1833_v50 = vsel %vm1823_vm1, %v1819_v61, 1326507024 }
 0x234   : > { %v1070_v26 = vadd.s32 1, %v2132_v38  ;;  %v1826_v19 = vsel %vm1822_vm4, %v1810_v41, %v1825_v1  ;;  %v1831_v29 = vsel %vm1821_vm3, %v1828_v25, %v1830_v60  ;;  %v1834_v54 = vsel %vm1822_vm4, %v1816_v37, %v1833_v50 }
 0x235   : > { %vm2131_vm5 = vcmp.lt.s32.totalorder %v2130_v57, 0  ;;  %v1835_v39 = vsel %vm1821_vm3, %v1832_v32, %v1834_v54  ;;  %v3667_v15 = vmul.u32.u64.low %v3657_v30, %v1831_v29  ;;  %v3668_v35 = vmul.u32.u64.high %v3657_v30, %v1831_v29, %v3667_v15 }
 0x236   : > { %v1027_v23 = vsel %vm2131_vm5, 0, %v2130_v57  ;;  %v1042_v52 = vsub.s32 4, %v3630_v45  ;;  %vm1071_vm6 = vcmp.gt.s32.totalorder %v1070_v26, 0  ;;  %vm1776_vm8 = vweird.f32 %v3393_v14 }
 0x237   : > { %v1028_v40 = vsub.s32 32, %v1027_v23  ;;  %v1032_v20 = vsub.s32 4294967266, %v1027_v23  ;;  %v1827_v34 = vsel %vm1821_vm3, %v1824_v59, %v1826_v19  ;;  %v1072_v53 = vsel %vm1071_vm6, %v1070_v26, 0 }
 0x238   : > { %v3675_v24 = vmul.u32.u64.low %v3657_v30, %v1835_v39  ;;  %v3676_v42 = vmul.u32.u64.high %v3657_v30, %v1835_v39, %v3675_v24  ;;  %v1029_v44 = vshll.u32 %v3644_v48, %v1027_v23  ;;  %v1074_v12 = vand.u32 31, %v1072_v53 }
 0x239   : > { %v1030_v56 = vshrl.u32 %v1012_v33, %v1028_v40  ;;  %v1033_v49 = vadd.s32 127, %v1032_v20  ;;  %vm1779_vm7 = vcmp.lt.s32.totalorder %v3632_v27, 2  ;;  %vm1780_vm9 = vcmp.eq.s32.totalorder %v3632_v27, 0 }
 0x23a   : > { %vm3683_vm10 = vcmp.le.f32.partialorder %v956_v13, 0.7853982  ;;  %v1846_v46 = vadd.s32 1, %v3668_v35  ;;  %vm1783_vm11 = vcmp.eq.s32.totalorder %v3632_v27, 2  ;;  %v1043_v33 = vsel %vm958_vm2, %v1042_v52, %v3630_v45 }
 0x23b   : > { %v1031_v43 = vor.u32 %v1030_v56, %v1029_v44  ;;  %v1034_v48 = vshll.u32 %v1033_v49, 23  ;;  %v1843_v7 = vmul.u32 %v3657_v30, %v1827_v34  ;;  %vm1845_vm12 = vc.u32 %v3676_v42, %v3667_v15 }
 0x23c   : > { %v2335_v31 = vpop.eup %2334  ;;  %v1075_v13 = vsub.s32 32, %v1074_v12  ;;  %v1847_v21 = vsel %vm1845_vm12, %v1846_v46, %v3668_v35  ;;  %v1068_v37 = vor.u32 8388608, %v3638_v63  ;;  %v1045_v6 = vsel %vm3683_vm10, 0, %v1043_v33 }
 0x23d   : > { %v2337_v41 = vpop.eup %2336  ;;  %v1784_v8 = vxor.u32 2147483648, %v2335_v31  ;;  %v1035_v10 = vor.u32 4788187, %v1034_v48  ;;  %v1848_v45 = vadd.s32 %v1847_v21, %v1843_v7  ;;  %v3701_v61 = vadd.f32 %v3259_v36, %v2519_v17 }
 0x23e   : > { %v1781_v28 = vxor.u32 2147483648, %v2337_v41  ;;  %v1038_v47 = vcvt.s32.f32 %v1031_v43  ;;  %v1073_v1 = vshrl.u32 %v1072_v53, 5  ;;  %v1078_v57 = vshrl.u32 %v2420_v62, %v1075_v13 }
 0x23f   : > { %v1785_v5 = vsel %vm1783_vm11, %v1784_v8, %v2337_v41  ;;  %v1036_v38 = vand.u32 2147483647, %v1035_v10  ;;  %v1849_v63 = vadd.s32 536870912, %v1848_v45  ;;  %v1081_v55 = vshrl.u32 %v2421_v0, %v1075_v13 }
 0x240   : > { %v1782_v30 = vsel %vm1780_vm9, %v2335_v31, %v1781_v28  ;;  %v1077_v17 = vshll.u32 %v2419_v58, %v1074_v12  ;;  %v1084_v36 = vshrl.u32 %v2422_v2, %v1075_v13  ;;  %v1080_v50 = vshll.u32 %v2420_v62, %v1074_v12 }
 0x241   : > { %v1786_v25 = vsel %vm1779_vm7, %v1782_v30, %v1785_v5  ;;  %v1039_v59 = vmul.f32 %v1038_v47, %v1036_v38  ;;  %v3714_v60 = vshrl.u32 %v1849_v63, 30  ;;  %v1083_v27 = vshll.u32 %v2421_v0, %v1074_v12 }
 0x242   : > { %v1787_v32 = vsel %vm1776_vm8, nan, %v1786_v25  ;;  %v1087_v26 = vshrl.u32 %v2423_v4, %v1075_v13  ;;  %v1086_v29 = vshll.u32 %v2422_v2, %v1074_v12  ;;  %v1089_v14 = vshll.u32 %v2423_v4, %v1074_v12 }
 0x243   : > { %2009 = vst [vmem:[%s2837_s10 + $0x68] sm:$0xff] %v1787_v32  ;;  %v1040_v19 = vxor.u32 2147483648, %v1039_v59  ;;  %v1090_v54 = vshrl.u32 %v2424_v11, %v1075_v13  ;;  %v1851_v23 = vshll.u32 %v3714_v60, 30  ;;  %v1079_v39 = vor.u32 %v1078_v57, %v1077_v17 }
 0x244   : > { %v1082_v35 = vor.u32 %v1081_v55, %v1080_v50  ;;  %v3723_v40 = vshll.u32 %v1068_v37, 8  ;;  %v1085_v52 = vor.u32 %v1084_v36, %v1083_v27  ;;  %v1088_v34 = vor.u32 %v1087_v26, %v1086_v29 }
 0x245   : > { %v1041_v20 = vsel %vm958_vm2, %v1040_v19, %v1039_v59  ;;  %v1091_v24 = vor.u32 %v1090_v54, %v1089_v14  ;;  %v1049_v44 = vadd.s32 3, %v1045_v6  ;;  %v1852_v56 = vsub.s32 %v1848_v45, %v1851_v23 }
 0x246   : > { %v1044_v53 = vsel %vm3683_vm10, %v3452_v9, %v1041_v20  ;;  %v1895_v49 = vand.u32 2139095040, %v3701_v61  ;;  %v1076_v12 = vshrl.u32 %v2419_v58, %v1075_v13  ;;  %vm1092_vm13 = vcmp.lt.s32.totalorder %v1073_v1, 1 }
 0x247   : > { %2338 = vcosq.f32 %v1044_v53  ;;  %vm1094_vm14 = vcmp.lt.s32.totalorder %v1073_v1, 3  ;;  %v1854_v46 = vsub.s32 0, %v1852_v56  ;;  %vm1095_vm15 = vcmp.lt.s32.totalorder %v1073_v1, 4 }
 0x248   : > { %2340 = vsinq.f32 %v1044_v53  ;;  %v1100_v31 = vsel %vm1092_vm13, %v1079_v39, %v1082_v35  ;;  %v1097_v43 = vsel %vm1095_vm15, %v1085_v52, 2102212464  ;;  %v1101_v48 = vsel %vm1095_vm15, %v1088_v34, 920167782 }
 0x249   : > { %v1104_v33 = vsel %vm1092_vm13, %v1082_v35, %v1085_v52  ;;  %v1105_v16 = vsel %vm1095_vm15, %v1091_v24, 1326507024  ;;  %v2161_v41 = vmin.u32 %v1854_v46, %v1852_v56  ;;  %vm1093_vm0 = vcmp.lt.s32.totalorder %v1073_v1, 2 }
 0x24a   : > { %v1102_v8 = vsel %vm1094_vm14, %v1085_v52, %v1101_v48  ;;  %v1106_v7 = vsel %vm1094_vm14, %v1088_v34, %v1105_v16  ;;  %v1050_v28 = vand.u32 3, %v1049_v44  ;;  %v1896_v21 = vshrl.u32 %v1895_v49, 23 }
 0x24b   : > { %v1103_v13 = vsel %vm1093_vm0, %v1100_v31, %v1102_v8  ;;  %v1107_v10 = vsel %vm1093_vm0, %v1104_v33, %v1106_v7  ;;  %v1856_v37 = vclz %v2161_v41  ;;  %v1096_v5 = vsel %vm1092_vm13, %v1076_v12, %v1079_v39 }
 0x24c   : > { %v1098_v6 = vsel %vm1094_vm14, %v1082_v35, %v1097_v43  ;;  %v3741_v45 = vmul.u32.u64.low %v3723_v40, %v1107_v10  ;;  %v3742_v30 = vmul.u32.u64.high %v3723_v40, %v1107_v10, %v3741_v45  ;;  %v2164_v63 = vadd.s32 4294967169, %v1896_v21 }
 0x24d   : > { %v3745_v38 = vmul.u32.u64.low %v3723_v40, %v1103_v13  ;;  %v3746_v47 = vmul.u32.u64.high %v3723_v40, %v1103_v13, %v3745_v38  ;;  %v2162_v25 = vadd.s32 4294967294, %v1856_v37  ;;  %vm1048_vm1 = vweird.f32 %v3452_v9 }
 0x24e   : > { %vm1052_vm2 = vcmp.eq.s32.totalorder %v1050_v28, 0  ;;  %v1099_v57 = vsel %vm1093_vm0, %v1096_v5, %v1098_v6  ;;  %vm1055_vm3 = vcmp.eq.s32.totalorder %v1050_v28, 2  ;;  %v1844_v55 = vadd.s32 %v3667_v15, %v3676_v42 }
 0x24f   : > { %vm2163_vm4 = vcmp.lt.s32.totalorder %v2162_v25, 0  ;;  %v1902_v32 = vadd.s32 1, %v2164_v63  ;;  %v1874_v36 = vsub.s32 4, %v3714_v60  ;;  %vm1117_vm5 = vc.u32 %v3742_v30, %v3745_v38 }
 0x250   : > { %v1859_v17 = vsel %vm2163_vm4, 0, %v2162_v25  ;;  %v1118_v50 = vadd.s32 1, %v3746_v47  ;;  %v1115_v29 = vmul.u32 %v3723_v40, %v1099_v57  ;;  %vm1051_vm8 = vcmp.lt.s32.totalorder %v1050_v28, 2 }
 0x251   : > { %v2339_v59 = vpop.eup %2338  ;;  %v1860_v19 = vsub.s32 32, %v1859_v17  ;;  %v1864_v1 = vsub.s32 4294967266, %v1859_v17  ;;  %v1861_v54 = vshll.u32 %v1852_v56, %v1859_v17  ;;  %vm1903_vm6 = vcmp.gt.s32.totalorder %v1902_v32, 0 }
 0x252   : > { %v2341_v27 = vpop.eup %2340  ;;  %v1056_v26 = vxor.u32 2147483648, %v2339_v59  ;;  %v1119_v15 = vsel %vm1117_vm5, %v1118_v50, %v3746_v47  ;;  %v1892_v52 = vand.u32 2147483647, %v3701_v61  ;;  %v1904_v34 = vsel %vm1903_vm6, %v1902_v32, 0 }
 0x253   : > { %v1053_v14 = vxor.u32 2147483648, %v2341_v27  ;;  %v1862_v23 = vshrl.u32 %v1844_v55, %v1860_v19  ;;  %v1865_v39 = vadd.s32 127, %v1864_v1  ;;  %v1120_v35 = vadd.s32 %v1119_v15, %v1115_v29 }
 0x254   : > { %v1057_v42 = vsel %vm1055_vm3, %v1056_v26, %v2341_v27  ;;  %vm1790_vm7 = vcmp.lt.s32.totalorder %v3545_v3, 0  ;;  %v1906_v49 = vand.u32 31, %v1904_v34  ;;  %v1899_v43 = vand.u32 8388607, %v1892_v52 }
 0x255   : > { %v1054_v20 = vsel %vm1052_vm2, %v2339_v59, %v1053_v14  ;;  %v1863_v53 = vor.u32 %v1862_v23, %v1861_v54  ;;  %v1866_v40 = vshll.u32 %v1865_v39, 23  ;;  %v1121_v44 = vadd.s32 536870912, %v1120_v35 }
 0x256   : > { %v1058_v24 = vsel %vm1051_vm8, %v1054_v20, %v1057_v42  ;;  %v1875_v46 = vsel %vm1790_vm7, %v1874_v36, %v3714_v60  ;;  %v1907_v48 = vsub.s32 32, %v1906_v49  ;;  %vm3775_vm9 = vcmp.le.f32.partialorder %v1788_v18, 0.7853982 }
 0x257   : > { %v1059_v56 = vsel %vm1048_vm1, nan, %v1058_v24  ;;  %v1867_v12 = vor.u32 4788187, %v1866_v40  ;;  %v3769_v31 = vshrl.u32 %v1121_v44, 30  ;;  %v1870_v16 = vcvt.s32.f32 %v1863_v53 }
 0x258   : > { %2002 = vst [vmem:[%s2837_s10 + $0x30] sm:$0xff] %v1059_v56  ;;  %v1877_v8 = vsel %vm3775_vm9, 0, %v1875_v46  ;;  %v1910_v60 = vshrl.u32 %v2420_v62, %v1907_v48  ;;  %v1913_v7 = vshrl.u32 %v2421_v0, %v1907_v48  ;;  %v1916_v28 = vshrl.u32 %v2422_v2, %v1907_v48 }
 0x259   : > { %v1868_v33 = vand.u32 2147483647, %v1867_v12  ;;  %v1123_v41 = vshll.u32 %v3769_v31, 30  ;;  %v1909_v18 = vshll.u32 %v2419_v58, %v1906_v49  ;;  %v1919_v21 = vshrl.u32 %v2423_v4, %v1907_v48 }
 0x25a   : > { %v1900_v37 = vor.u32 8388608, %v1899_v43  ;;  %v1905_v5 = vshrl.u32 %v1904_v34, 5  ;;  %v1912_v6 = vshll.u32 %v2420_v62, %v1906_v49  ;;  %v1915_v45 = vshll.u32 %v2421_v0, %v1906_v49 }
 0x25b   : > { %v1871_v13 = vmul.f32 %v1870_v16, %v1868_v33  ;;  %v1124_v10 = vsub.s32 %v1120_v35, %v1123_v41  ;;  %v1911_v63 = vor.u32 %v1910_v60, %v1909_v18  ;;  %v1918_v57 = vshll.u32 %v2422_v2, %v1906_v49 }
 0x25c   : > { %v1914_v55 = vor.u32 %v1913_v7, %v1912_v6  ;;  %v1917_v32 = vor.u32 %v1916_v28, %v1915_v45  ;;  %v1921_v59 = vshll.u32 %v2423_v4, %v1906_v49  ;;  %v1922_v17 = vshrl.u32 %v2424_v11, %v1907_v48 }
 0x25d   : > { %v1872_v47 = vxor.u32 2147483648, %v1871_v13  ;;  %v1126_v25 = vsub.s32 0, %v1124_v10  ;;  %v1920_v27 = vor.u32 %v1919_v21, %v1918_v57  ;;  %v1881_v0 = vadd.s32 3, %v1877_v8 }
 0x25e   : > { %v1923_v26 = vor.u32 %v1922_v17, %v1921_v59  ;;  %v1940_v19 = vshll.u32 %v1900_v37, 8  ;;  %vm1924_vm10 = vcmp.lt.s32.totalorder %v1905_v5, 1  ;;  %vm1927_vm11 = vcmp.lt.s32.totalorder %v1905_v5, 4 }
 0x25f   : > { %v1873_v36 = vsel %vm1790_vm7, %v1872_v47, %v1871_v13  ;;  %v2133_v50 = vmin.u32 %v1126_v25, %v1124_v10  ;;  %v1908_v4 = vshrl.u32 %v2419_v58, %v1907_v48  ;;  %v1929_v11 = vsel %vm1927_vm11, %v1917_v32, 2102212464 }
 0x260   : > { %v1876_v62 = vsel %vm3775_vm9, %v3545_v3, %v1873_v36  ;;  %v1932_v1 = vsel %vm1924_vm10, %v1911_v63, %v1914_v55  ;;  %vm1926_vm12 = vcmp.lt.s32.totalorder %v1905_v5, 3  ;;  %v1933_v14 = vsel %vm1927_vm11, %v1920_v27, 920167782 }
 0x261   : > { %2342 = vcosq.f32 %v1876_v62  ;;  %v1128_v2 = vclz %v2133_v50  ;;  %v1936_v54 = vsel %vm1924_vm10, %v1914_v55, %v1917_v32  ;;  %vm1925_vm13 = vcmp.lt.s32.totalorder %v1905_v5, 2 }
 0x262   : > { %2344 = vsinq.f32 %v1876_v62  ;;  %v1928_v15 = vsel %vm1924_vm10, %v1908_v4, %v1911_v63  ;;  %v1934_v42 = vsel %vm1926_vm12, %v1917_v32, %v1933_v14  ;;  %v1937_v23 = vsel %vm1927_vm11, %v1923_v26, 1326507024 }
 0x263   : > { %v2134_v29 = vadd.s32 4294967294, %v1128_v2  ;;  %v1930_v39 = vsel %vm1926_vm12, %v1914_v55, %v1929_v11  ;;  %v1935_v35 = vsel %vm1925_vm13, %v1932_v1, %v1934_v42  ;;  %v1938_v20 = vsel %vm1926_vm12, %v1920_v27, %v1937_v23 }
 0x264   : > { %v1939_v24 = vsel %vm1925_vm13, %v1936_v54, %v1938_v20  ;;  %v3800_v53 = vmul.u32.u64.low %v1940_v19, %v1935_v35  ;;  %v3801_v58 = vmul.u32.u64.high %v1940_v19, %v1935_v35, %v3800_v53  ;;  %v1116_v40 = vadd.s32 %v3745_v38, %v3742_v30 }
 0x265   : > { %vm2135_vm14 = vcmp.lt.s32.totalorder %v2134_v29, 0  ;;  %v1882_v49 = vand.u32 3, %v1881_v0  ;;  %v3805_v12 = vmul.u32.u64.low %v1940_v19, %v1939_v24  ;;  %v3806_v46 = vmul.u32.u64.high %v1940_v19, %v1939_v24, %v3805_v12 }
 0x266   : > { %v1131_v34 = vsel %vm2135_vm14, 0, %v2134_v29  ;;  %v1931_v33 = vsel %vm1925_vm13, %v1928_v15, %v1930_v39  ;;  %v1950_v16 = vadd.s32 1, %v3801_v58  ;;  %vm1880_vm3 = vweird.f32 %v3545_v3 }
 0x267   : > { %v1132_v44 = vsub.s32 32, %v1131_v34  ;;  %v1136_v56 = vsub.s32 4294967266, %v1131_v34  ;;  %v1133_v43 = vshll.u32 %v1124_v10, %v1131_v34  ;;  %v1947_v13 = vmul.u32 %v1940_v19, %v1931_v33 }
 0x268   : > { %vm1949_vm15 = vc.u32 %v3806_v46, %v3800_v53  ;;  %vm1887_vm0 = vcmp.eq.s32.totalorder %v1882_v49, 2  ;;  %vm1884_vm1 = vcmp.eq.s32.totalorder %v1882_v49, 0  ;;  %vm1883_vm2 = vcmp.lt.s32.totalorder %v1882_v49, 2 }
 0x269   : > { %v1134_v48 = vshrl.u32 %v1116_v40, %v1132_v44  ;;  %v1137_v9 = vadd.s32 127, %v1136_v56  ;;  %v1951_v10 = vsel %vm1949_vm15, %v1950_v16, %v3801_v58  ;;  %v1146_v57 = vsub.s32 4, %v3769_v31 }
 0x26a   : > { %v1952_v21 = vadd.s32 %v1951_v10, %v1947_v13  ;;  %vm1062_vm4 = vcmp.lt.s32.totalorder %v3607_v51, 0  ;;  %vm1061_vm5 = vcmp.le.f32.partialorder %v1060_v22, 0.7853982  ;;  %v1948_v14 = vadd.s32 %v3800_v53, %v3806_v46 }
 0x26b   : > { %v2343_v41 = vpop.eup %2342  ;;  %v1135_v8 = vor.u32 %v1134_v48, %v1133_v43  ;;  %v1138_v60 = vshll.u32 %v1137_v9, 23  ;;  %v1147_v36 = vsel %vm1062_vm4, %v1146_v57, %v3769_v31  ;;  %vm1152_vm10 = vweird.f32 %v3607_v51 }
 0x26c   : > { %v2345_v7 = vpop.eup %2344  ;;  %v1888_v28 = vxor.u32 2147483648, %v2343_v41  ;;  %v1953_v47 = vadd.s32 536870912, %v1952_v21  ;;  %v1149_v27 = vsel %vm1061_vm5, 0, %v1147_v36  ;;  %vm1894_vm11 = vcmp.lt.s32.totalorder %v3701_v61, 0 }
 0x26d   : > { %v1885_v30 = vxor.u32 2147483648, %v2345_v7  ;;  %v1139_v38 = vor.u32 4788187, %v1138_v60  ;;  %v1142_v6 = vcvt.s32.f32 %v1135_v8  ;;  %v1153_v26 = vadd.s32 3, %v1149_v27 }
 0x26e   : > { %v1889_v18 = vsel %vm1887_vm0, %v1888_v28, %v2345_v7  ;;  %v1954_v55 = vshrl.u32 %v1953_v47, 30  ;;  %vm1893_vm12 = vcmp.le.f32.partialorder %v1892_v52, 0.7853982  ;;  %vm1984_vm0 = vweird.f32 %v3701_v61 }
 0x26f   : > { %v1886_v37 = vsel %vm1884_vm1, %v2343_v41, %v1885_v30  ;;  %v1140_v5 = vand.u32 2147483647, %v1139_v38  ;;  %v1154_v4 = vand.u32 3, %v1153_v26 }
 0x270   : > { %v1890_v45 = vsel %vm1883_vm2, %v1886_v37, %v1889_v18  ;;  %v1955_v59 = vshll.u32 %v1954_v55, 30  ;;  %v1978_v12 = vsub.s32 4, %v1954_v55 }
 0x271   : > { %v1891_v25 = vsel %vm1880_vm3, nan, %v1890_v45  ;;  %v1143_v63 = vmul.f32 %v1142_v6, %v1140_v5  ;;  %vm1156_vm8 = vcmp.eq.s32.totalorder %v1154_v4, 0  ;;  %vm1159_vm7 = vcmp.eq.s32.totalorder %v1154_v4, 2 }
 0x272   : > { %2010 = vst [vmem:[%s2837_s10 + $0x70] sm:$0xff] %v1891_v25  ;;  %v1956_v50 = vsub.s32 %v1952_v21, %v1955_v59  ;;  %vm1155_vm9 = vcmp.lt.s32.totalorder %v1154_v4, 2 }
 0x273   : > { %v1144_v32 = vxor.u32 2147483648, %v1143_v63 }
 0x274   : > { %v1958_v62 = vsub.s32 0, %v1956_v50 }
 0x275   : > { %v1145_v17 = vsel %vm1062_vm4, %v1144_v32, %v1143_v63 }
 0x276   : > { %v1148_v3 = vsel %vm1061_vm5, %v3607_v51, %v1145_v17  ;;  %v2165_v0 = vmin.u32 %v1958_v62, %v1956_v50  ;;  %v1979_v51 = vsel %vm1894_vm11, %v1978_v12, %v1954_v55 }
 0x277   : > { %2346 = vcosq.f32 %v1148_v3  ;;  %v1981_v9 = vsel %vm1893_vm12, 0, %v1979_v51 }
 0x278   : > { %2348 = vsinq.f32 %v1148_v3  ;;  %v1960_v19 = vclz %v2165_v0  ;;  %v1985_v33 = vadd.s32 3, %v1981_v9 }
 0x27a   : > { %v2166_v2 = vadd.s32 4294967294, %v1960_v19  ;;  %v1986_v16 = vand.u32 3, %v1985_v33 }
 0x27c   : > { %vm2167_vm6 = vcmp.lt.s32.totalorder %v2166_v2, 0  ;;  %vm1991_vm13 = vcmp.eq.s32.totalorder %v1986_v16, 2  ;;  %vm1988_vm14 = vcmp.eq.s32.totalorder %v1986_v16, 0  ;;  %vm1987_vm15 = vcmp.lt.s32.totalorder %v1986_v16, 2 }
 0x27d   : > { %v1963_v1 = vsel %vm2167_vm6, 0, %v2166_v2 }
 0x27e   : > { %v1964_v31 = vsub.s32 32, %v1963_v1  ;;  %v1968_v54 = vsub.s32 4294967266, %v1963_v1  ;;  %v1965_v23 = vshll.u32 %v1956_v50, %v1963_v1 }
 0x280   : > { %v1966_v39 = vshrl.u32 %v1948_v14, %v1964_v31  ;;  %v1969_v35 = vadd.s32 127, %v1968_v54 }
 0x281   : > { %v2347_v11 = vpop.eup %2346 }
 0x282   : > { %v2349_v29 = vpop.eup %2348  ;;  %v1160_v22 = vxor.u32 2147483648, %v2347_v11  ;;  %v1967_v24 = vor.u32 %v1966_v39, %v1965_v23  ;;  %v1970_v58 = vshll.u32 %v1969_v35, 23 }
 0x283   : > { %v1157_v15 = vxor.u32 2147483648, %v2349_v29 }
 0x284   : > { %v1161_v42 = vsel %vm1159_vm7, %v1160_v22, %v2349_v29  ;;  %v1971_v53 = vor.u32 4788187, %v1970_v58  ;;  %v1974_v56 = vcvt.s32.f32 %v1967_v24 }
 0x285   : > { %v1158_v20 = vsel %vm1156_vm8, %v2347_v11, %v1157_v15 }
 0x286   : > { %v1162_v34 = vsel %vm1155_vm9, %v1158_v20, %v1161_v42  ;;  %v1972_v44 = vand.u32 2147483647, %v1971_v53 }
 0x287   : > { %v1163_v40 = vsel %vm1152_vm10, nan, %v1162_v34 }
 0x288   : > { %2003 = vst [vmem:[%s2837_s10 + $0x38] sm:$0xff] %v1163_v40  ;;  %v1975_v49 = vmul.f32 %v1974_v56, %v1972_v44 }
 0x28a   : > { %v1976_v46 = vxor.u32 2147483648, %v1975_v49 }
 0x28c   : > { %v1977_v43 = vsel %vm1894_vm11, %v1976_v46, %v1975_v49 }
 0x28d   : > { %v1980_v48 = vsel %vm1893_vm12, %v3701_v61, %v1977_v43 }
 0x28e   : > { %2350 = vcosq.f32 %v1980_v48 }
 0x28f   : > { %2352 = vsinq.f32 %v1980_v48 }
 0x298   : > { %v2351_v41 = vpop.eup %2350 }
 0x299   : > { %v2353_v8 = vpop.eup %2352  ;;  %v1992_v60 = vxor.u32 2147483648, %v2351_v41 }
 0x29a   : > { %v1989_v7 = vxor.u32 2147483648, %v2353_v8 }
 0x29b   : > { %v1993_v52 = vsel %vm1991_vm13, %v1992_v60, %v2353_v8 }
 0x29c   : > { %v1990_v28 = vsel %vm1988_vm14, %v2351_v41, %v1989_v7 }
 0x29d   : > { %v1994_v13 = vsel %vm1987_vm15, %v1990_v28, %v1993_v52 }
 0x29e   : > { %v1995_v30 = vsel %vm1984_vm0, nan, %v1994_v13 }
 0x29f   : > { %2011 = vst [vmem:[%s2837_s10 + $0x78] sm:$0xff] %v1995_v30 }
 0x2a0   : > { %2367 = shalt.err (!%p2364_p3)
}
 0x2a1   : > { %s2368_s29 = scalar_lea.hbm %s3832_s24, 2048  ;;  %s2372_s5 = scalar_lea.hbm %s3884_s3, 8192 }
 0x2a2   : > { %p2369_p4 = scmp.ne.s32.totalorder %s3832_s24, %s2368_s29  ;;  %p2373_p9 = scmp.lt.u32.totalorder %s3832_s24, %s3884_s3 }
 0x2a3   : > { %p2374_p10 = scmp.lt.u32.totalorder %s2372_s5, %s2368_s29  ;;  %p2376_p12 = scmp.lt.u32.totalorder %s2368_s29, %s3832_s24 }
 0x2a4   : > { %p2370_p7 = pnand %p2369_p4, %p2486_p5 }
 0x2a5   : > { %p2375_p11 = por %p2374_p10, %p2373_p9 }
 0x2a6   : > { %p2371_p8 = pneg %p2370_p7 }
 0x2a7   : > { %p2377_p13 = por %p2376_p12, %p2375_p11 }
 0x2a9   : > { %p2378_p0 = pnand %p2377_p13, %p2371_p8 }
 0x2ab   : > { %2381 = shalt.err (!%p2378_p0)
}
 0x2ac   : > { %s2426_s8 = smov 256   ;;  %s2427_s9 = smov 16  }
 0x2ad   : > { %2242 = dma.vmem_to_hbm [thread:$0]  (%p2486_p5), %s3834_s17, 2048, %s3832_s24, %s3840_s16, %s2426_s8, %s2426_s8, %s2427_s9  }
 0x2ae PF: > { %p2248_p1 = scmp.ge.s32.totalorder %s2416_s15, 2  ;;  %s2042_s10 = sand.u32 1, %s2404_s12  }
 0x2af   : > { %s2043_s11 = scalar_lea.sflag [#allocation3], %s2042_s10 }
 0x2b0   : > { %p2245_p2 = pnand %p2248_p1, %p2490_p6 }
 0x2b2   : > { %2399 = dma.done.wait (!%p2245_p2), %s2043_s11, 2048  }
 0x2b3   : > { %2401 = vsyncadd (!%p2245_p2), %s2043_s11, 4294965248  ;;  %p13_p3 = scmp.ge.s32.totalorder %s2473_s18, 6   ;;  %s3915_s12 = smov %s2408_s13 }
 0x2b4   : > { %s3916_s13 = smov %s2412_s14  ;;  %s3917_s14 = smov %s2484_s21 }
 0x2b5   : > { %s3918_s15 = smov %s2473_s18  ;;  %15 = sbr.rel (!%p13_p3) target bundleno = 3 (0x3), region = 67 }
 0x2bc   :  { %2048 = vsyncpa [#allocation3], 1 }
 0x2bd   :  { %2050 = vsyncpa [#allocation3 + $0x1], 1 }

</bundles_post_ra>
